<compile_context>
chip_gen: v7x
topology: tpu7x:2x2x1
jax: 0.10.0
libtpu: 0.0.40
codegen_flags: <defaults>
</compile_context>

<pallas_src>
import functools

import jax
import jax.numpy as jnp
import numpy as np
from jax.experimental import pallas as pl
from jax.experimental.pallas import tpu as pltpu


def _round_up(x, m):
    return (x + m - 1) // m * m


# ---------------------------------------------------------------------------
# Generic fused (X @ W + b) kernel, rows tiled over the grid.  Used for the
# hoisted time-parallel projections (FNN init, x-gates, final Linear1).
# ---------------------------------------------------------------------------
def _linear_kernel(x_ref, w_ref, b_ref, o_ref):
    o_ref[...] = (jnp.dot(x_ref[...], w_ref[...],
                          preferred_element_type=jnp.float32) + b_ref[...])


def pallas_linear(x, w, b, *, max_block_rows=512):
    """(M, K) @ (K, N) + (N,) -> (M, N) with M tiled over a 1-D grid."""
    M, K = x.shape
    _, N = w.shape
    tm = min(_round_up(M, 8), max_block_rows)
    M_pad = _round_up(M, tm)
    if M_pad != M:
        x = jnp.pad(x, ((0, M_pad - M), (0, 0)))
    out = pl.pallas_call(
        _linear_kernel,
        out_shape=jax.ShapeDtypeStruct((M_pad, N), jnp.float32),
        grid_spec=pltpu.PrefetchScalarGridSpec(
            num_scalar_prefetch=0,
            grid=(M_pad // tm,),
            in_specs=[
                pl.BlockSpec((tm, K), lambda i: (i, 0)),
                pl.BlockSpec((K, N), lambda i: (0, 0)),
                pl.BlockSpec((1, N), lambda i: (0, 0)),
            ],
            out_specs=pl.BlockSpec((tm, N), lambda i: (i, 0)),
        ),
        compiler_params=pltpu.CompilerParams(
            dimension_semantics=("parallel",)),
    )(x, w, b.reshape(1, N))
    return out[:M]


# ---------------------------------------------------------------------------
# Sequential LSTM recurrence, chunked over time.
# ---------------------------------------------------------------------------
def _lstm_chunk_kernel(gx_ref, h0_ref, whh_ref, hs_ref, h_scr, c_scr, *,
                       hp, tc):
    """One grid step = one chunk of `tc` timesteps for one batch block.

    gx_ref : (tc, Bblk, 4*hp)  precomputed x @ W_ih^T + b for this chunk
    h0_ref : (Bblk, hp)        initial hidden/cell state (= FNN(initial_state))
    whh_ref: (hp, 4*hp)        recurrent weight (pre-transposed, gate-padded)
    hs_ref : (tc, Bblk, hp)    per-timestep hidden-state output
    h_scr, c_scr : (Bblk, hp)  VMEM carry across time chunks
    """
    @pl.when(pl.program_id(1) == 0)
    def _():
        h_scr[...] = h0_ref[...]
        c_scr[...] = h0_ref[...]

    def step(s, carry):
        gates = gx_ref[s] + jnp.dot(h_scr[...], whh_ref[...],
                                    preferred_element_type=jnp.float32)
        # 128-lane-aligned gate blocks, PyTorch gate order [i | f | g | o].
        i = jax.nn.sigmoid(gates[:, 0 * hp:1 * hp])
        f = jax.nn.sigmoid(gates[:, 1 * hp:2 * hp])
        g = jnp.tanh(gates[:, 2 * hp:3 * hp])
        o = jax.nn.sigmoid(gates[:, 3 * hp:4 * hp])
        c_new = f * c_scr[...] + i * g
        h_new = o * jnp.tanh(c_new)
        c_scr[...] = c_new
        h_scr[...] = h_new
        hs_ref[s] = h_new
        return carry

    # Unrolled inner loop amortizes the ~0.35 us/grid-step overhead and lets
    # the scheduler keep W_hh and the h/c carry hot across timesteps.
    jax.lax.fori_loop(0, tc, step, 0, unroll=True)


def lstm_recurrence(gates_x, h0, whh_p, *, time_chunk):
    """gates_x: (T, B, 4*Hp) time-major; h0: (B, Hp); returns hs: (T, B, Hp)."""
    T, B, G = gates_x.shape
    Hp = G // 4
    Tc = min(time_chunk, T)
    T_pad = _round_up(T, Tc)
    if T_pad != T:  # padded trailing steps compute garbage that is discarded
        gates_x = jnp.pad(gates_x, ((0, T_pad - T), (0, 0), (0, 0)))

    # Batch block: whole batch unless it splits cleanly into 8-row blocks
    # (second-to-last tile dim must be a multiple of 8 or the full dim).
    b_blk = 8 if (B % 8 == 0 and B > 8) else B
    n_b = B // b_blk

    kernel = functools.partial(_lstm_chunk_kernel, hp=Hp, tc=Tc)
    hs = pl.pallas_call(
        kernel,
        out_shape=jax.ShapeDtypeStruct((T_pad, B, Hp), jnp.float32),
        grid_spec=pltpu.PrefetchScalarGridSpec(
            num_scalar_prefetch=0,
            # batch axis "parallel" (2 TCs on v7x), time axis carries the
            # recurrence -> "arbitrary".
            grid=(n_b, T_pad // Tc),
            in_specs=[
                pl.BlockSpec((Tc, b_blk, G), lambda b, t: (t, b, 0)),
                pl.BlockSpec((b_blk, Hp), lambda b, t: (b, 0)),
                # Constant-index weight block (loaded once per pipeline; for
                # very large H, pipeline_mode=pl.Buffered(1) would halve its
                # resident VMEM).
                pl.BlockSpec((Hp, G), lambda b, t: (0, 0)),
            ],
            out_specs=pl.BlockSpec((Tc, b_blk, Hp), lambda b, t: (t, b, 0)),
            scratch_shapes=[
                pltpu.VMEM((b_blk, Hp), jnp.float32),   # h carry
                pltpu.VMEM((b_blk, Hp), jnp.float32),   # c carry
            ],
        ),
        compiler_params=pltpu.CompilerParams(
            dimension_semantics=("parallel", "arbitrary")),
    )(gates_x, h0, whh_p)
    return hs[:T]


# ---------------------------------------------------------------------------
# Full forward pass.
# ---------------------------------------------------------------------------
@functools.partial(jax.jit,
                   static_argnames=("hidden_dim", "out_dim", "time_chunk"))
def base_model_forward(params, x, initial_state, *, hidden_dim, out_dim,
                       time_chunk=16):
    """Equivalent of Base_model.forward(x, initial_state); x: (B, T, in_dim)."""
    B, T, in_dim = x.shape
    assert initial_state.shape == (1, B, in_dim)
    H = hidden_dim
    Hp = _round_up(H, 128)      # lane-aligned per-gate width

    # ---- parameter re-layout: transpose + pad each gate block to Hp lanes ---
    def pad_gate_rows(w):       # (4H, D) -> (4Hp, D), per-gate zero padding
        w4 = jnp.pad(w.reshape(4, H, -1), ((0, 0), (0, Hp - H), (0, 0)))
        return w4.reshape(4 * Hp, -1)

    wih_p = pad_gate_rows(params["w_ih"]).T                       # (in_dim, 4Hp)
    whh_p = jnp.pad(pad_gate_rows(params["w_hh"]),
                    ((0, 0), (0, Hp - H))).T                      # (Hp, 4Hp)
    b_p = jnp.pad((params["b_ih"] + params["b_hh"]).reshape(4, H),
                  ((0, 0), (0, Hp - H))).reshape(4 * Hp)          # (4Hp,)
    wf_p = jnp.pad(params["w_fnn"], ((0, Hp - H), (0, 0))).T      # (in_dim, Hp)
    bf_p = jnp.pad(params["b_fnn"], (0, Hp - H))                  # (Hp,)
    wl_p = jnp.pad(params["w_lin"].T, ((0, Hp - H), (0, 0)))      # (Hp, out_dim)
    bl = params["b_lin"]                                          # (out_dim,)

    # ---- 1. h0 = c0 = FNN(initial_state) ------------------------------------
    h0 = pallas_linear(initial_state[0], wf_p, bf_p)              # (B, Hp)

    # ---- 2. hoisted time-parallel input projection (one big MXU matmul) -----
    x_rows = jnp.transpose(x, (1, 0, 2)).reshape(T * B, in_dim)   # time-major
    gates_x = pallas_linear(x_rows, wih_p, b_p).reshape(T, B, 4 * Hp)

    # ---- 3. sequential LSTM recurrence, chunked over time -------------------
    hs = lstm_recurrence(gates_x, h0, whh_p, time_chunk=time_chunk)  # (T,B,Hp)

    # ---- 4. hoisted time-parallel output projection --------------------------
    out = pallas_linear(hs.reshape(T * B, Hp), wl_p, bl)          # (T*B, out)
    return jnp.transpose(out.reshape(T, B, out_dim), (1, 0, 2))   # (B, T, out)


# ---------------------------------------------------------------------------
# Pure-JAX reference (mirrors torch.nn.LSTM + Linear semantics).
# ---------------------------------------------------------------------------
def reference_forward(params, x, initial_state, hidden_dim, out_dim):
    H = hidden_dim
    h0 = initial_state[0] @ params["w_fnn"].T + params["b_fnn"]
    c0 = h0
    b = params["b_ih"] + params["b_hh"]

    def step(carry, x_t):
        h, c = carry
        gates = x_t @ params["w_ih"].T + h @ params["w_hh"].T + b
        i = jax.nn.sigmoid(gates[:, 0 * H:1 * H])
        f = jax.nn.sigmoid(gates[:, 1 * H:2 * H])
        g = jnp.tanh(gates[:, 2 * H:3 * H])
        o = jax.nn.sigmoid(gates[:, 3 * H:4 * H])
        c_new = f * c + i * g
        h_new = o * jnp.tanh(c_new)
        return (h_new, c_new), h_new

    x_tm = jnp.transpose(x, (1, 0, 2))
    _, hs = jax.lax.scan(step, (h0, c0), x_tm)          # (T, B, H)
    out = hs @ params["w_lin"].T + params["b_lin"]
    return jnp.transpose(out, (1, 0, 2))


def init_params(key, in_dim, hidden_dim, out_dim):
    ks = jax.random.split(key, 8)
    s = 0.1
    return {
        "w_ih": s * jax.random.normal(ks[0], (4 * hidden_dim, in_dim), jnp.float32),
        "w_hh": s * jax.random.normal(ks[1], (4 * hidden_dim, hidden_dim), jnp.float32),
        "b_ih": s * jax.random.normal(ks[2], (4 * hidden_dim,), jnp.float32),
        "b_hh": s * jax.random.normal(ks[3], (4 * hidden_dim,), jnp.float32),
        "w_fnn": s * jax.random.normal(ks[4], (hidden_dim, in_dim), jnp.float32),
        "b_fnn": s * jax.random.normal(ks[5], (hidden_dim,), jnp.float32),
        "w_lin": s * jax.random.normal(ks[6], (out_dim, hidden_dim), jnp.float32),
        "b_lin": s * jax.random.normal(ks[7], (out_dim,), jnp.float32),
    }


if __name__ == "__main__":
    B, T = 2, 8
    in_dim, hidden_dim, out_dim = 16, 32, 8

    key = jax.random.PRNGKey(0)
    kp, kx, ki = jax.random.split(key, 3)
    params = init_params(kp, in_dim, hidden_dim, out_dim)
    x = jax.random.normal(kx, (B, T, in_dim), jnp.float32)
    initial_state = jax.random.normal(ki, (1, B, in_dim), jnp.float32)

    out = base_model_forward(params, x, initial_state,
                             hidden_dim=hidden_dim, out_dim=out_dim)
    out = jax.block_until_ready(out)
    assert out.shape == (B, T, out_dim), out.shape

    ref = reference_forward(params, x, initial_state, hidden_dim, out_dim)
    np.testing.assert_allclose(np.asarray(out), np.asarray(ref),
                               rtol=1e-4, atol=1e-5)
    print("KERNEL_OK")
</pallas_src>

<mosaic_0001>
module attributes {stable_mosaic.version = 11 : i64} {
  func.func @_linear_kernel(%arg0: i32, %arg1: memref<16x16xf32, #tpu.memory_space<vmem>>, %arg2: memref<16x512xf32, #tpu.memory_space<vmem>>, %arg3: memref<1x512xf32, #tpu.memory_space<vmem>>, %arg4: memref<16x512xf32, #tpu.memory_space<vmem>>) attributes {dimension_semantics = [#tpu.dimension_semantics<parallel>], iteration_bounds = array<i64: 1>, scalar_prefetch = 0 : i64, scratch_operands = 0 : i64, tpu.core_type = #tpu.core_type<tc>, window_params = [{transform_indices = @transform_0, window_bounds = array<i64: 16, 16>}, {pipeline_mode = #tpu.pipeline_mode<synchronous>, transform_indices = @transform_1, window_bounds = array<i64: 16, 512>}, {pipeline_mode = #tpu.pipeline_mode<synchronous>, transform_indices = @transform_2, window_bounds = array<i64: 1, 512>}, {transform_indices = @transform_3, window_bounds = array<i64: 16, 512>}]} {
    %c0 = arith.constant 0 : index
    %c0_0 = arith.constant 0 : index
    %0 = vector.load %arg1[%c0, %c0_0] : memref<16x16xf32, #tpu.memory_space<vmem>>, vector<16x16xf32>
    %c0_1 = arith.constant 0 : index
    %c0_2 = arith.constant 0 : index
    %1 = vector.load %arg2[%c0_1, %c0_2] : memref<16x512xf32, #tpu.memory_space<vmem>>, vector<16x512xf32>
    %cst = arith.constant dense<0.000000e+00> : vector<16x512xf32>
    %2 = tpu.matmul %0, %1, %cst {dimension_numbers = #tpu.dot_dimension_numbers<[1], [0], [0], [1], [0, 0, 1, 1], [], []>} : vector<16x16xf32>, vector<16x512xf32>, vector<16x512xf32> -> vector<16x512xf32>
    %c0_3 = arith.constant 0 : index
    %c0_4 = arith.constant 0 : index
    %3 = vector.load %arg3[%c0_3, %c0_4] : memref<1x512xf32, #tpu.memory_space<vmem>>, vector<1x512xf32>
    %4 = vector.broadcast %3 : vector<1x512xf32> to vector<16x512xf32>
    %5 = arith.addf %2, %4 : vector<16x512xf32>
    %c0_5 = arith.constant 0 : index
    %c0_6 = arith.constant 0 : index
    %6 = vector.load %arg4[%c0_5, %c0_6] : memref<16x512xf32, #tpu.memory_space<vmem>>, vector<16x512xf32>
    tpu.vector_store %arg4[%c0_5, %c0_6], %5 {strides = array<i32>} : memref<16x512xf32, #tpu.memory_space<vmem>>, vector<16x512xf32>,
    return
  }
  func.func @transform_0(%arg0: i32) -> (i32, i32) {
    %c0_i32 = arith.constant 0 : i32
    %c0_i32_0 = arith.constant 0 : i32
    return %arg0, %c0_i32 : i32, i32
  }
  func.func @transform_1(%arg0: i32) -> (i32, i32) {
    %c0_i32 = arith.constant 0 : i32
    %c0_i32_0 = arith.constant 0 : i32
    %c0_i32_1 = arith.constant 0 : i32
    return %c0_i32, %c0_i32_0 : i32, i32
  }
  func.func @transform_2(%arg0: i32) -> (i32, i32) {
    %c0_i32 = arith.constant 0 : i32
    %c0_i32_0 = arith.constant 0 : i32
    %c0_i32_1 = arith.constant 0 : i32
    return %c0_i32, %c0_i32_0 : i32, i32
  }
  func.func @transform_3(%arg0: i32) -> (i32, i32) {
    %c0_i32 = arith.constant 0 : i32
    %c0_i32_0 = arith.constant 0 : i32
    return %arg0, %c0_i32 : i32, i32
  }
}

module attributes {stable_mosaic.version = 11 : i64} {
  func.func @_linear_kernel(%arg0: i32, %arg1: memref<8x16xf32, #tpu.memory_space<vmem>>, %arg2: memref<16x128xf32, #tpu.memory_space<vmem>>, %arg3: memref<1x128xf32, #tpu.memory_space<vmem>>, %arg4: memref<8x128xf32, #tpu.memory_space<vmem>>) attributes {dimension_semantics = [#tpu.dimension_semantics<parallel>], iteration_bounds = array<i64: 1>, scalar_prefetch = 0 : i64, scratch_operands = 0 : i64, tpu.core_type = #tpu.core_type<tc>, window_params = [{transform_indices = @transform_0, window_bounds = array<i64: 8, 16>}, {pipeline_mode = #tpu.pipeline_mode<synchronous>, transform_indices = @transform_1, window_bounds = array<i64: 16, 128>}, {pipeline_mode = #tpu.pipeline_mode<synchronous>, transform_indices = @transform_2, window_bounds = array<i64: 1, 128>}, {transform_indices = @transform_3, window_bounds = array<i64: 8, 128>}]} {
    %c0 = arith.constant 0 : index
    %c0_0 = arith.constant 0 : index
    %0 = vector.load %arg1[%c0, %c0_0] : memref<8x16xf32, #tpu.memory_space<vmem>>, vector<8x16xf32>
    %c0_1 = arith.constant 0 : index
    %c0_2 = arith.constant 0 : index
    %1 = vector.load %arg2[%c0_1, %c0_2] : memref<16x128xf32, #tpu.memory_space<vmem>>, vector<16x128xf32>
    %cst = arith.constant dense<0.000000e+00> : vector<8x128xf32>
    %2 = tpu.matmul %0, %1, %cst {dimension_numbers = #tpu.dot_dimension_numbers<[1], [0], [0], [1], [0, 0, 1, 1], [], []>} : vector<8x16xf32>, vector<16x128xf32>, vector<8x128xf32> -> vector<8x128xf32>
    %c0_3 = arith.constant 0 : index
    %c0_4 = arith.constant 0 : index
    %3 = vector.load %arg3[%c0_3, %c0_4] : memref<1x128xf32, #tpu.memory_space<vmem>>, vector<1x128xf32>
    %4 = vector.broadcast %3 : vector<1x128xf32> to vector<8x128xf32>
    %5 = arith.addf %2, %4 : vector<8x128xf32>
    %c0_5 = arith.constant 0 : index
    %c0_6 = arith.constant 0 : index
    %6 = vector.load %arg4[%c0_5, %c0_6] : memref<8x128xf32, #tpu.memory_space<vmem>>, vector<8x128xf32>
    tpu.vector_store %arg4[%c0_5, %c0_6], %5 {strides = array<i32>} : memref<8x128xf32, #tpu.memory_space<vmem>>, vector<8x128xf32>,
    return
  }
  func.func @transform_0(%arg0: i32) -> (i32, i32) {
    %c0_i32 = arith.constant 0 : i32
    %c0_i32_0 = arith.constant 0 : i32
    return %arg0, %c0_i32 : i32, i32
  }
  func.func @transform_1(%arg0: i32) -> (i32, i32) {
    %c0_i32 = arith.constant 0 : i32
    %c0_i32_0 = arith.constant 0 : i32
    %c0_i32_1 = arith.constant 0 : i32
    return %c0_i32, %c0_i32_0 : i32, i32
  }
  func.func @transform_2(%arg0: i32) -> (i32, i32) {
    %c0_i32 = arith.constant 0 : i32
    %c0_i32_0 = arith.constant 0 : i32
    %c0_i32_1 = arith.constant 0 : i32
    return %c0_i32, %c0_i32_0 : i32, i32
  }
  func.func @transform_3(%arg0: i32) -> (i32, i32) {
    %c0_i32 = arith.constant 0 : i32
    %c0_i32_0 = arith.constant 0 : i32
    return %arg0, %c0_i32 : i32, i32
  }
}

module attributes {stable_mosaic.version = 11 : i64} {
  func.func @_lstm_chunk_kernel(%arg0: i32, %arg1: i32, %arg2: memref<8x2x512xf32, #tpu.memory_space<vmem>>, %arg3: memref<2x128xf32, #tpu.memory_space<vmem>>, %arg4: memref<128x512xf32, #tpu.memory_space<vmem>>, %arg5: memref<8x2x128xf32, #tpu.memory_space<vmem>>, %arg6: memref<2x128xf32, #tpu.memory_space<vmem>>, %arg7: memref<2x128xf32, #tpu.memory_space<vmem>>) attributes {dimension_semantics = [#tpu.dimension_semantics<parallel>, #tpu.dimension_semantics<arbitrary>], iteration_bounds = array<i64: 1, 1>, scalar_prefetch = 0 : i64, scratch_operands = 2 : i64, tpu.core_type = #tpu.core_type<tc>, window_params = [{transform_indices = @transform_0, window_bounds = array<i64: 8, 2, 512>}, {transform_indices = @transform_1, window_bounds = array<i64: 2, 128>}, {pipeline_mode = #tpu.pipeline_mode<synchronous>, transform_indices = @transform_2, window_bounds = array<i64: 128, 512>}, {transform_indices = @transform_3, window_bounds = array<i64: 8, 2, 128>}]} {
    %c0_i32 = arith.constant 0 : i32
    %0 = arith.cmpi eq, %arg1, %c0_i32 : i32
    %1 = arith.extui %0 : i1 to i32
    %c0_i32_0 = arith.constant 0 : i32
    %2 = arith.cmpi ne, %1, %c0_i32_0 : i32
    scf.if %2 {
      %c0_144 = arith.constant 0 : index
      %c0_145 = arith.constant 0 : index
      %315 = vector.load %arg3[%c0_144, %c0_145] : memref<2x128xf32, #tpu.memory_space<vmem>>, vector<2x128xf32>
      %c0_146 = arith.constant 0 : index
      %c0_147 = arith.constant 0 : index
      %316 = vector.load %arg6[%c0_146, %c0_147] : memref<2x128xf32, #tpu.memory_space<vmem>>, vector<2x128xf32>
      tpu.vector_store %arg6[%c0_146, %c0_147], %315 {strides = array<i32>} : memref<2x128xf32, #tpu.memory_space<vmem>>, vector<2x128xf32>,
      %c0_148 = arith.constant 0 : index
      %c0_149 = arith.constant 0 : index
      %317 = vector.load %arg3[%c0_148, %c0_149] : memref<2x128xf32, #tpu.memory_space<vmem>>, vector<2x128xf32>
      %c0_150 = arith.constant 0 : index
      %c0_151 = arith.constant 0 : index
      %318 = vector.load %arg7[%c0_150, %c0_151] : memref<2x128xf32, #tpu.memory_space<vmem>>, vector<2x128xf32>
      tpu.vector_store %arg7[%c0_150, %c0_151], %317 {strides = array<i32>} : memref<2x128xf32, #tpu.memory_space<vmem>>, vector<2x128xf32>,
    } else {
    }
    %c0_i32_1 = arith.constant 0 : i32
    %3 = arith.index_cast %c0_i32_1 : i32 to index
    %c0 = arith.constant 0 : index
    %c0_2 = arith.constant 0 : index
    %4 = vector.load %arg2[%3, %c0, %c0_2] : memref<8x2x512xf32, #tpu.memory_space<vmem>>, vector<1x2x512xf32>
    %5 = vector.shape_cast %4 : vector<1x2x512xf32> to vector<2x512xf32>
    %c0_3 = arith.constant 0 : index
    %c0_4 = arith.constant 0 : index
    %6 = vector.load %arg6[%c0_3, %c0_4] : memref<2x128xf32, #tpu.memory_space<vmem>>, vector<2x128xf32>
    %c0_5 = arith.constant 0 : index
    %c0_6 = arith.constant 0 : index
    %7 = vector.load %arg4[%c0_5, %c0_6] : memref<128x512xf32, #tpu.memory_space<vmem>>, vector<128x512xf32>
    %cst = arith.constant dense<0.000000e+00> : vector<2x512xf32>
    %8 = tpu.matmul %6, %7, %cst {dimension_numbers = #tpu.dot_dimension_numbers<[1], [0], [0], [1], [0, 0, 1, 1], [], []>} : vector<2x128xf32>, vector<128x512xf32>, vector<2x512xf32> -> vector<2x512xf32>
    %9 = arith.addf %5, %8 : vector<2x512xf32>
    %10 = vector.extract_strided_slice %9 {offsets = [0, 0], sizes = [2, 128], strides = [1, 1]} : vector<2x512xf32> to vector<2x128xf32>
    %11 = arith.negf %10 : vector<2x128xf32>
    %12 = math.exp %11 : vector<2x128xf32>
    %cst_7 = arith.constant 1.000000e+00 : f32
    %13 = vector.broadcast %cst_7 : f32 to vector<2x128xf32>
    %14 = arith.addf %13, %12 : vector<2x128xf32>
    %15 = arith.divf %13, %14 : vector<2x128xf32>
    %16 = vector.extract_strided_slice %9 {offsets = [0, 128], sizes = [2, 128], strides = [1, 1]} : vector<2x512xf32> to vector<2x128xf32>
    %17 = arith.negf %16 : vector<2x128xf32>
    %18 = math.exp %17 : vector<2x128xf32>
    %cst_8 = arith.constant 1.000000e+00 : f32
    %19 = vector.broadcast %cst_8 : f32 to vector<2x128xf32>
    %20 = arith.addf %19, %18 : vector<2x128xf32>
    %21 = arith.divf %19, %20 : vector<2x128xf32>
    %22 = vector.extract_strided_slice %9 {offsets = [0, 256], sizes = [2, 128], strides = [1, 1]} : vector<2x512xf32> to vector<2x128xf32>
    %23 = math.tanh %22 : vector<2x128xf32>
    %24 = vector.extract_strided_slice %9 {offsets = [0, 384], sizes = [2, 128], strides = [1, 1]} : vector<2x512xf32> to vector<2x128xf32>
    %25 = arith.negf %24 : vector<2x128xf32>
    %26 = math.exp %25 : vector<2x128xf32>
    %cst_9 = arith.constant 1.000000e+00 : f32
    %27 = vector.broadcast %cst_9 : f32 to vector<2x128xf32>
    %28 = arith.addf %27, %26 : vector<2x128xf32>
    %29 = arith.divf %27, %28 : vector<2x128xf32>
    %c0_10 = arith.constant 0 : index
    %c0_11 = arith.constant 0 : index
    %30 = vector.load %arg7[%c0_10, %c0_11] : memref<2x128xf32, #tpu.memory_space<vmem>>, vector<2x128xf32>
    %31 = arith.mulf %21, %30 : vector<2x128xf32>
    %32 = arith.mulf %15, %23 : vector<2x128xf32>
    %33 = arith.addf %31, %32 : vector<2x128xf32>
    %34 = math.tanh %33 : vector<2x128xf32>
    %35 = arith.mulf %29, %34 : vector<2x128xf32>
    %c0_12 = arith.constant 0 : index
    %c0_13 = arith.constant 0 : index
    %36 = vector.load %arg7[%c0_12, %c0_13] : memref<2x128xf32, #tpu.memory_space<vmem>>, vector<2x128xf32>
    tpu.vector_store %arg7[%c0_12, %c0_13], %33 {strides = array<i32>} : memref<2x128xf32, #tpu.memory_space<vmem>>, vector<2x128xf32>,
    %c0_14 = arith.constant 0 : index
    %c0_15 = arith.constant 0 : index
    %37 = vector.load %arg6[%c0_14, %c0_15] : memref<2x128xf32, #tpu.memory_space<vmem>>, vector<2x128xf32>
    tpu.vector_store %arg6[%c0_14, %c0_15], %35 {strides = array<i32>} : memref<2x128xf32, #tpu.memory_space<vmem>>, vector<2x128xf32>,
    %38 = arith.index_cast %c0_i32_1 : i32 to index
    %c0_16 = arith.constant 0 : index
    %c0_17 = arith.constant 0 : index
    %39 = vector.load %arg5[%38, %c0_16, %c0_17] : memref<8x2x128xf32, #tpu.memory_space<vmem>>, vector<1x2x128xf32>
    %40 = vector.shape_cast %39 : vector<1x2x128xf32> to vector<2x128xf32>
    %41 = vector.shape_cast %35 : vector<2x128xf32> to vector<1x2x128xf32>
    tpu.vector_store %arg5[%38, %c0_16, %c0_17], %41 {strides = array<i32>} : memref<8x2x128xf32, #tpu.memory_space<vmem>>, vector<1x2x128xf32>,
    %c1_i32 = arith.constant 1 : i32
    %42 = arith.index_cast %c1_i32 : i32 to index
    %c0_18 = arith.constant 0 : index
    %c0_19 = arith.constant 0 : index
    %43 = vector.load %arg2[%42, %c0_18, %c0_19] : memref<8x2x512xf32, #tpu.memory_space<vmem>>, vector<1x2x512xf32>
    %44 = vector.shape_cast %43 : vector<1x2x512xf32> to vector<2x512xf32>
    %c0_20 = arith.constant 0 : index
    %c0_21 = arith.constant 0 : index
    %45 = vector.load %arg6[%c0_20, %c0_21] : memref<2x128xf32, #tpu.memory_space<vmem>>, vector<2x128xf32>
    %c0_22 = arith.constant 0 : index
    %c0_23 = arith.constant 0 : index
    %46 = vector.load %arg4[%c0_22, %c0_23] : memref<128x512xf32, #tpu.memory_space<vmem>>, vector<128x512xf32>
    %cst_24 = arith.constant dense<0.000000e+00> : vector<2x512xf32>
    %47 = tpu.matmul %45, %46, %cst_24 {dimension_numbers = #tpu.dot_dimension_numbers<[1], [0], [0], [1], [0, 0, 1, 1], [], []>} : vector<2x128xf32>, vector<128x512xf32>, vector<2x512xf32> -> vector<2x512xf32>
    %48 = arith.addf %44, %47 : vector<2x512xf32>
    %49 = vector.extract_strided_slice %48 {offsets = [0, 0], sizes = [2, 128], strides = [1, 1]} : vector<2x512xf32> to vector<2x128xf32>
    %50 = arith.negf %49 : vector<2x128xf32>
    %51 = math.exp %50 : vector<2x128xf32>
    %cst_25 = arith.constant 1.000000e+00 : f32
    %52 = vector.broadcast %cst_25 : f32 to vector<2x128xf32>
    %53 = arith.addf %52, %51 : vector<2x128xf32>
    %54 = arith.divf %52, %53 : vector<2x128xf32>
    %55 = vector.extract_strided_slice %48 {offsets = [0, 128], sizes = [2, 128], strides = [1, 1]} : vector<2x512xf32> to vector<2x128xf32>
    %56 = arith.negf %55 : vector<2x128xf32>
    %57 = math.exp %56 : vector<2x128xf32>
    %cst_26 = arith.constant 1.000000e+00 : f32
    %58 = vector.broadcast %cst_26 : f32 to vector<2x128xf32>
    %59 = arith.addf %58, %57 : vector<2x128xf32>
    %60 = arith.divf %58, %59 : vector<2x128xf32>
    %61 = vector.extract_strided_slice %48 {offsets = [0, 256], sizes = [2, 128], strides = [1, 1]} : vector<2x512xf32> to vector<2x128xf32>
    %62 = math.tanh %61 : vector<2x128xf32>
    %63 = vector.extract_strided_slice %48 {offsets = [0, 384], sizes = [2, 128], strides = [1, 1]} : vector<2x512xf32> to vector<2x128xf32>
    %64 = arith.negf %63 : vector<2x128xf32>
    %65 = math.exp %64 : vector<2x128xf32>
    %cst_27 = arith.constant 1.000000e+00 : f32
    %66 = vector.broadcast %cst_27 : f32 to vector<2x128xf32>
    %67 = arith.addf %66, %65 : vector<2x128xf32>
    %68 = arith.divf %66, %67 : vector<2x128xf32>
    %c0_28 = arith.constant 0 : index
    %c0_29 = arith.constant 0 : index
    %69 = vector.load %arg7[%c0_28, %c0_29] : memref<2x128xf32, #tpu.memory_space<vmem>>, vector<2x128xf32>
    %70 = arith.mulf %60, %69 : vector<2x128xf32>
    %71 = arith.mulf %54, %62 : vector<2x128xf32>
    %72 = arith.addf %70, %71 : vector<2x128xf32>
    %73 = math.tanh %72 : vector<2x128xf32>
    %74 = arith.mulf %68, %73 : vector<2x128xf32>
    %c0_30 = arith.constant 0 : index
    %c0_31 = arith.constant 0 : index
    %75 = vector.load %arg7[%c0_30, %c0_31] : memref<2x128xf32, #tpu.memory_space<vmem>>, vector<2x128xf32>
    tpu.vector_store %arg7[%c0_30, %c0_31], %72 {strides = array<i32>} : memref<2x128xf32, #tpu.memory_space<vmem>>, vector<2x128xf32>,
    %c0_32 = arith.constant 0 : index
    %c0_33 = arith.constant 0 : index
    %76 = vector.load %arg6[%c0_32, %c0_33] : memref<2x128xf32, #tpu.memory_space<vmem>>, vector<2x128xf32>
    tpu.vector_store %arg6[%c0_32, %c0_33], %74 {strides = array<i32>} : memref<2x128xf32, #tpu.memory_space<vmem>>, vector<2x128xf32>,
    %77 = arith.index_cast %c1_i32 : i32 to index
    %c0_34 = arith.constant 0 : index
    %c0_35 = arith.constant 0 : index
    %78 = vector.load %arg5[%77, %c0_34, %c0_35] : memref<8x2x128xf32, #tpu.memory_space<vmem>>, vector<1x2x128xf32>
    %79 = vector.shape_cast %78 : vector<1x2x128xf32> to vector<2x128xf32>
    %80 = vector.shape_cast %74 : vector<2x128xf32> to vector<1x2x128xf32>
    tpu.vector_store %arg5[%77, %c0_34, %c0_35], %80 {strides = array<i32>} : memref<8x2x128xf32, #tpu.memory_space<vmem>>, vector<1x2x128xf32>,
    %c2_i32 = arith.constant 2 : i32
    %81 = arith.index_cast %c2_i32 : i32 to index
    %c0_36 = arith.constant 0 : index
    %c0_37 = arith.constant 0 : index
    %82 = vector.load %arg2[%81, %c0_36, %c0_37] : memref<8x2x512xf32, #tpu.memory_space<vmem>>, vector<1x2x512xf32>
    %83 = vector.shape_cast %82 : vector<1x2x512xf32> to vector<2x512xf32>
    %c0_38 = arith.constant 0 : index
    %c0_39 = arith.constant 0 : index
    %84 = vector.load %arg6[%c0_38, %c0_39] : memref<2x128xf32, #tpu.memory_space<vmem>>, vector<2x128xf32>
    %c0_40 = arith.constant 0 : index
    %c0_41 = arith.constant 0 : index
    %85 = vector.load %arg4[%c0_40, %c0_41] : memref<128x512xf32, #tpu.memory_space<vmem>>, vector<128x512xf32>
    %cst_42 = arith.constant dense<0.000000e+00> : vector<2x512xf32>
    %86 = tpu.matmul %84, %85, %cst_42 {dimension_numbers = #tpu.dot_dimension_numbers<[1], [0], [0], [1], [0, 0, 1, 1], [], []>} : vector<2x128xf32>, vector<128x512xf32>, vector<2x512xf32> -> vector<2x512xf32>
    %87 = arith.addf %83, %86 : vector<2x512xf32>
    %88 = vector.extract_strided_slice %87 {offsets = [0, 0], sizes = [2, 128], strides = [1, 1]} : vector<2x512xf32> to vector<2x128xf32>
    %89 = arith.negf %88 : vector<2x128xf32>
    %90 = math.exp %89 : vector<2x128xf32>
    %cst_43 = arith.constant 1.000000e+00 : f32
    %91 = vector.broadcast %cst_43 : f32 to vector<2x128xf32>
    %92 = arith.addf %91, %90 : vector<2x128xf32>
    %93 = arith.divf %91, %92 : vector<2x128xf32>
    %94 = vector.extract_strided_slice %87 {offsets = [0, 128], sizes = [2, 128], strides = [1, 1]} : vector<2x512xf32> to vector<2x128xf32>
    %95 = arith.negf %94 : vector<2x128xf32>
    %96 = math.exp %95 : vector<2x128xf32>
    %cst_44 = arith.constant 1.000000e+00 : f32
    %97 = vector.broadcast %cst_44 : f32 to vector<2x128xf32>
    %98 = arith.addf %97, %96 : vector<2x128xf32>
    %99 = arith.divf %97, %98 : vector<2x128xf32>
    %100 = vector.extract_strided_slice %87 {offsets = [0, 256], sizes = [2, 128], strides = [1, 1]} : vector<2x512xf32> to vector<2x128xf32>
    %101 = math.tanh %100 : vector<2x128xf32>
    %102 = vector.extract_strided_slice %87 {offsets = [0, 384], sizes = [2, 128], strides = [1, 1]} : vector<2x512xf32> to vector<2x128xf32>
    %103 = arith.negf %102 : vector<2x128xf32>
    %104 = math.exp %103 : vector<2x128xf32>
    %cst_45 = arith.constant 1.000000e+00 : f32
    %105 = vector.broadcast %cst_45 : f32 to vector<2x128xf32>
    %106 = arith.addf %105, %104 : vector<2x128xf32>
    %107 = arith.divf %105, %106 : vector<2x128xf32>
    %c0_46 = arith.constant 0 : index
    %c0_47 = arith.constant 0 : index
    %108 = vector.load %arg7[%c0_46, %c0_47] : memref<2x128xf32, #tpu.memory_space<vmem>>, vector<2x128xf32>
    %109 = arith.mulf %99, %108 : vector<2x128xf32>
    %110 = arith.mulf %93, %101 : vector<2x128xf32>
    %111 = arith.addf %109, %110 : vector<2x128xf32>
    %112 = math.tanh %111 : vector<2x128xf32>
    %113 = arith.mulf %107, %112 : vector<2x128xf32>
    %c0_48 = arith.constant 0 : index
    %c0_49 = arith.constant 0 : index
    %114 = vector.load %arg7[%c0_48, %c0_49] : memref<2x128xf32, #tpu.memory_space<vmem>>, vector<2x128xf32>
    tpu.vector_store %arg7[%c0_48, %c0_49], %111 {strides = array<i32>} : memref<2x128xf32, #tpu.memory_space<vmem>>, vector<2x128xf32>,
    %c0_50 = arith.constant 0 : index
    %c0_51 = arith.constant 0 : index
    %115 = vector.load %arg6[%c0_50, %c0_51] : memref<2x128xf32, #tpu.memory_space<vmem>>, vector<2x128xf32>
    tpu.vector_store %arg6[%c0_50, %c0_51], %113 {strides = array<i32>} : memref<2x128xf32, #tpu.memory_space<vmem>>, vector<2x128xf32>,
    %116 = arith.index_cast %c2_i32 : i32 to index
    %c0_52 = arith.constant 0 : index
    %c0_53 = arith.constant 0 : index
    %117 = vector.load %arg5[%116, %c0_52, %c0_53] : memref<8x2x128xf32, #tpu.memory_space<vmem>>, vector<1x2x128xf32>
    %118 = vector.shape_cast %117 : vector<1x2x128xf32> to vector<2x128xf32>
    %119 = vector.shape_cast %113 : vector<2x128xf32> to vector<1x2x128xf32>
    tpu.vector_store %arg5[%116, %c0_52, %c0_53], %119 {strides = array<i32>} : memref<8x2x128xf32, #tpu.memory_space<vmem>>, vector<1x2x128xf32>,
    %c3_i32 = arith.constant 3 : i32
    %120 = arith.index_cast %c3_i32 : i32 to index
    %c0_54 = arith.constant 0 : index
    %c0_55 = arith.constant 0 : index
    %121 = vector.load %arg2[%120, %c0_54, %c0_55] : memref<8x2x512xf32, #tpu.memory_space<vmem>>, vector<1x2x512xf32>
    %122 = vector.shape_cast %121 : vector<1x2x512xf32> to vector<2x512xf32>
    %c0_56 = arith.constant 0 : index
    %c0_57 = arith.constant 0 : index
    %123 = vector.load %arg6[%c0_56, %c0_57] : memref<2x128xf32, #tpu.memory_space<vmem>>, vector<2x128xf32>
    %c0_58 = arith.constant 0 : index
    %c0_59 = arith.constant 0 : index
    %124 = vector.load %arg4[%c0_58, %c0_59] : memref<128x512xf32, #tpu.memory_space<vmem>>, vector<128x512xf32>
    %cst_60 = arith.constant dense<0.000000e+00> : vector<2x512xf32>
    %125 = tpu.matmul %123, %124, %cst_60 {dimension_numbers = #tpu.dot_dimension_numbers<[1], [0], [0], [1], [0, 0, 1, 1], [], []>} : vector<2x128xf32>, vector<128x512xf32>, vector<2x512xf32> -> vector<2x512xf32>
    %126 = arith.addf %122, %125 : vector<2x512xf32>
    %127 = vector.extract_strided_slice %126 {offsets = [0, 0], sizes = [2, 128], strides = [1, 1]} : vector<2x512xf32> to vector<2x128xf32>
    %128 = arith.negf %127 : vector<2x128xf32>
    %129 = math.exp %128 : vector<2x128xf32>
    %cst_61 = arith.constant 1.000000e+00 : f32
    %130 = vector.broadcast %cst_61 : f32 to vector<2x128xf32>
    %131 = arith.addf %130, %129 : vector<2x128xf32>
    %132 = arith.divf %130, %131 : vector<2x128xf32>
    %133 = vector.extract_strided_slice %126 {offsets = [0, 128], sizes = [2, 128], strides = [1, 1]} : vector<2x512xf32> to vector<2x128xf32>
    %134 = arith.negf %133 : vector<2x128xf32>
    %135 = math.exp %134 : vector<2x128xf32>
    %cst_62 = arith.constant 1.000000e+00 : f32
    %136 = vector.broadcast %cst_62 : f32 to vector<2x128xf32>
    %137 = arith.addf %136, %135 : vector<2x128xf32>
    %138 = arith.divf %136, %137 : vector<2x128xf32>
    %139 = vector.extract_strided_slice %126 {offsets = [0, 256], sizes = [2, 128], strides = [1, 1]} : vector<2x512xf32> to vector<2x128xf32>
    %140 = math.tanh %139 : vector<2x128xf32>
    %141 = vector.extract_strided_slice %126 {offsets = [0, 384], sizes = [2, 128], strides = [1, 1]} : vector<2x512xf32> to vector<2x128xf32>
    %142 = arith.negf %141 : vector<2x128xf32>
    %143 = math.exp %142 : vector<2x128xf32>
    %cst_63 = arith.constant 1.000000e+00 : f32
    %144 = vector.broadcast %cst_63 : f32 to vector<2x128xf32>
    %145 = arith.addf %144, %143 : vector<2x128xf32>
    %146 = arith.divf %144, %145 : vector<2x128xf32>
    %c0_64 = arith.constant 0 : index
    %c0_65 = arith.constant 0 : index
    %147 = vector.load %arg7[%c0_64, %c0_65] : memref<2x128xf32, #tpu.memory_space<vmem>>, vector<2x128xf32>
    %148 = arith.mulf %138, %147 : vector<2x128xf32>
    %149 = arith.mulf %132, %140 : vector<2x128xf32>
    %150 = arith.addf %148, %149 : vector<2x128xf32>
    %151 = math.tanh %150 : vector<2x128xf32>
    %152 = arith.mulf %146, %151 : vector<2x128xf32>
    %c0_66 = arith.constant 0 : index
    %c0_67 = arith.constant 0 : index
    %153 = vector.load %arg7[%c0_66, %c0_67] : memref<2x128xf32, #tpu.memory_space<vmem>>, vector<2x128xf32>
    tpu.vector_store %arg7[%c0_66, %c0_67], %150 {strides = array<i32>} : memref<2x128xf32, #tpu.memory_space<vmem>>, vector<2x128xf32>,
    %c0_68 = arith.constant 0 : index
    %c0_69 = arith.constant 0 : index
    %154 = vector.load %arg6[%c0_68, %c0_69] : memref<2x128xf32, #tpu.memory_space<vmem>>, vector<2x128xf32>
    tpu.vector_store %arg6[%c0_68, %c0_69], %152 {strides = array<i32>} : memref<2x128xf32, #tpu.memory_space<vmem>>, vector<2x128xf32>,
    %155 = arith.index_cast %c3_i32 : i32 to index
    %c0_70 = arith.constant 0 : index
    %c0_71 = arith.constant 0 : index
    %156 = vector.load %arg5[%155, %c0_70, %c0_71] : memref<8x2x128xf32, #tpu.memory_space<vmem>>, vector<1x2x128xf32>
    %157 = vector.shape_cast %156 : vector<1x2x128xf32> to vector<2x128xf32>
    %158 = vector.shape_cast %152 : vector<2x128xf32> to vector<1x2x128xf32>
    tpu.vector_store %arg5[%155, %c0_70, %c0_71], %158 {strides = array<i32>} : memref<8x2x128xf32, #tpu.memory_space<vmem>>, vector<1x2x128xf32>,
    %c4_i32 = arith.constant 4 : i32
    %159 = arith.index_cast %c4_i32 : i32 to index
    %c0_72 = arith.constant 0 : index
    %c0_73 = arith.constant 0 : index
    %160 = vector.load %arg2[%159, %c0_72, %c0_73] : memref<8x2x512xf32, #tpu.memory_space<vmem>>, vector<1x2x512xf32>
    %161 = vector.shape_cast %160 : vector<1x2x512xf32> to vector<2x512xf32>
    %c0_74 = arith.constant 0 : index
    %c0_75 = arith.constant 0 : index
    %162 = vector.load %arg6[%c0_74, %c0_75] : memref<2x128xf32, #tpu.memory_space<vmem>>, vector<2x128xf32>
    %c0_76 = arith.constant 0 : index
    %c0_77 = arith.constant 0 : index
    %163 = vector.load %arg4[%c0_76, %c0_77] : memref<128x512xf32, #tpu.memory_space<vmem>>, vector<128x512xf32>
    %cst_78 = arith.constant dense<0.000000e+00> : vector<2x512xf32>
    %164 = tpu.matmul %162, %163, %cst_78 {dimension_numbers = #tpu.dot_dimension_numbers<[1], [0], [0], [1], [0, 0, 1, 1], [], []>} : vector<2x128xf32>, vector<128x512xf32>, vector<2x512xf32> -> vector<2x512xf32>
    %165 = arith.addf %161, %164 : vector<2x512xf32>
    %166 = vector.extract_strided_slice %165 {offsets = [0, 0], sizes = [2, 128], strides = [1, 1]} : vector<2x512xf32> to vector<2x128xf32>
    %167 = arith.negf %166 : vector<2x128xf32>
    %168 = math.exp %167 : vector<2x128xf32>
    %cst_79 = arith.constant 1.000000e+00 : f32
    %169 = vector.broadcast %cst_79 : f32 to vector<2x128xf32>
    %170 = arith.addf %169, %168 : vector<2x128xf32>
    %171 = arith.divf %169, %170 : vector<2x128xf32>
    %172 = vector.extract_strided_slice %165 {offsets = [0, 128], sizes = [2, 128], strides = [1, 1]} : vector<2x512xf32> to vector<2x128xf32>
    %173 = arith.negf %172 : vector<2x128xf32>
    %174 = math.exp %173 : vector<2x128xf32>
    %cst_80 = arith.constant 1.000000e+00 : f32
    %175 = vector.broadcast %cst_80 : f32 to vector<2x128xf32>
    %176 = arith.addf %175, %174 : vector<2x128xf32>
    %177 = arith.divf %175, %176 : vector<2x128xf32>
    %178 = vector.extract_strided_slice %165 {offsets = [0, 256], sizes = [2, 128], strides = [1, 1]} : vector<2x512xf32> to vector<2x128xf32>
    %179 = math.tanh %178 : vector<2x128xf32>
    %180 = vector.extract_strided_slice %165 {offsets = [0, 384], sizes = [2, 128], strides = [1, 1]} : vector<2x512xf32> to vector<2x128xf32>
    %181 = arith.negf %180 : vector<2x128xf32>
    %182 = math.exp %181 : vector<2x128xf32>
    %cst_81 = arith.constant 1.000000e+00 : f32
    %183 = vector.broadcast %cst_81 : f32 to vector<2x128xf32>
    %184 = arith.addf %183, %182 : vector<2x128xf32>
    %185 = arith.divf %183, %184 : vector<2x128xf32>
    %c0_82 = arith.constant 0 : index
    %c0_83 = arith.constant 0 : index
    %186 = vector.load %arg7[%c0_82, %c0_83] : memref<2x128xf32, #tpu.memory_space<vmem>>, vector<2x128xf32>
    %187 = arith.mulf %177, %186 : vector<2x128xf32>
    %188 = arith.mulf %171, %179 : vector<2x128xf32>
    %189 = arith.addf %187, %188 : vector<2x128xf32>
    %190 = math.tanh %189 : vector<2x128xf32>
    %191 = arith.mulf %185, %190 : vector<2x128xf32>
    %c0_84 = arith.constant 0 : index
    %c0_85 = arith.constant 0 : index
    %192 = vector.load %arg7[%c0_84, %c0_85] : memref<2x128xf32, #tpu.memory_space<vmem>>, vector<2x128xf32>
    tpu.vector_store %arg7[%c0_84, %c0_85], %189 {strides = array<i32>} : memref<2x128xf32, #tpu.memory_space<vmem>>, vector<2x128xf32>,
    %c0_86 = arith.constant 0 : index
    %c0_87 = arith.constant 0 : index
    %193 = vector.load %arg6[%c0_86, %c0_87] : memref<2x128xf32, #tpu.memory_space<vmem>>, vector<2x128xf32>
    tpu.vector_store %arg6[%c0_86, %c0_87], %191 {strides = array<i32>} : memref<2x128xf32, #tpu.memory_space<vmem>>, vector<2x128xf32>,
    %194 = arith.index_cast %c4_i32 : i32 to index
    %c0_88 = arith.constant 0 : index
    %c0_89 = arith.constant 0 : index
    %195 = vector.load %arg5[%194, %c0_88, %c0_89] : memref<8x2x128xf32, #tpu.memory_space<vmem>>, vector<1x2x128xf32>
    %196 = vector.shape_cast %195 : vector<1x2x128xf32> to vector<2x128xf32>
    %197 = vector.shape_cast %191 : vector<2x128xf32> to vector<1x2x128xf32>
    tpu.vector_store %arg5[%194, %c0_88, %c0_89], %197 {strides = array<i32>} : memref<8x2x128xf32, #tpu.memory_space<vmem>>, vector<1x2x128xf32>,
    %c5_i32 = arith.constant 5 : i32
    %198 = arith.index_cast %c5_i32 : i32 to index
    %c0_90 = arith.constant 0 : index
    %c0_91 = arith.constant 0 : index
    %199 = vector.load %arg2[%198, %c0_90, %c0_91] : memref<8x2x512xf32, #tpu.memory_space<vmem>>, vector<1x2x512xf32>
    %200 = vector.shape_cast %199 : vector<1x2x512xf32> to vector<2x512xf32>
    %c0_92 = arith.constant 0 : index
    %c0_93 = arith.constant 0 : index
    %201 = vector.load %arg6[%c0_92, %c0_93] : memref<2x128xf32, #tpu.memory_space<vmem>>, vector<2x128xf32>
    %c0_94 = arith.constant 0 : index
    %c0_95 = arith.constant 0 : index
    %202 = vector.load %arg4[%c0_94, %c0_95] : memref<128x512xf32, #tpu.memory_space<vmem>>, vector<128x512xf32>
    %cst_96 = arith.constant dense<0.000000e+00> : vector<2x512xf32>
    %203 = tpu.matmul %201, %202, %cst_96 {dimension_numbers = #tpu.dot_dimension_numbers<[1], [0], [0], [1], [0, 0, 1, 1], [], []>} : vector<2x128xf32>, vector<128x512xf32>, vector<2x512xf32> -> vector<2x512xf32>
    %204 = arith.addf %200, %203 : vector<2x512xf32>
    %205 = vector.extract_strided_slice %204 {offsets = [0, 0], sizes = [2, 128], strides = [1, 1]} : vector<2x512xf32> to vector<2x128xf32>
    %206 = arith.negf %205 : vector<2x128xf32>
    %207 = math.exp %206 : vector<2x128xf32>
    %cst_97 = arith.constant 1.000000e+00 : f32
    %208 = vector.broadcast %cst_97 : f32 to vector<2x128xf32>
    %209 = arith.addf %208, %207 : vector<2x128xf32>
    %210 = arith.divf %208, %209 : vector<2x128xf32>
    %211 = vector.extract_strided_slice %204 {offsets = [0, 128], sizes = [2, 128], strides = [1, 1]} : vector<2x512xf32> to vector<2x128xf32>
    %212 = arith.negf %211 : vector<2x128xf32>
    %213 = math.exp %212 : vector<2x128xf32>
    %cst_98 = arith.constant 1.000000e+00 : f32
    %214 = vector.broadcast %cst_98 : f32 to vector<2x128xf32>
    %215 = arith.addf %214, %213 : vector<2x128xf32>
    %216 = arith.divf %214, %215 : vector<2x128xf32>
    %217 = vector.extract_strided_slice %204 {offsets = [0, 256], sizes = [2, 128], strides = [1, 1]} : vector<2x512xf32> to vector<2x128xf32>
    %218 = math.tanh %217 : vector<2x128xf32>
    %219 = vector.extract_strided_slice %204 {offsets = [0, 384], sizes = [2, 128], strides = [1, 1]} : vector<2x512xf32> to vector<2x128xf32>
    %220 = arith.negf %219 : vector<2x128xf32>
    %221 = math.exp %220 : vector<2x128xf32>
    %cst_99 = arith.constant 1.000000e+00 : f32
    %222 = vector.broadcast %cst_99 : f32 to vector<2x128xf32>
    %223 = arith.addf %222, %221 : vector<2x128xf32>
    %224 = arith.divf %222, %223 : vector<2x128xf32>
    %c0_100 = arith.constant 0 : index
    %c0_101 = arith.constant 0 : index
    %225 = vector.load %arg7[%c0_100, %c0_101] : memref<2x128xf32, #tpu.memory_space<vmem>>, vector<2x128xf32>
    %226 = arith.mulf %216, %225 : vector<2x128xf32>
    %227 = arith.mulf %210, %218 : vector<2x128xf32>
    %228 = arith.addf %226, %227 : vector<2x128xf32>
    %229 = math.tanh %228 : vector<2x128xf32>
    %230 = arith.mulf %224, %229 : vector<2x128xf32>
    %c0_102 = arith.constant 0 : index
    %c0_103 = arith.constant 0 : index
    %231 = vector.load %arg7[%c0_102, %c0_103] : memref<2x128xf32, #tpu.memory_space<vmem>>, vector<2x128xf32>
    tpu.vector_store %arg7[%c0_102, %c0_103], %228 {strides = array<i32>} : memref<2x128xf32, #tpu.memory_space<vmem>>, vector<2x128xf32>,
    %c0_104 = arith.constant 0 : index
    %c0_105 = arith.constant 0 : index
    %232 = vector.load %arg6[%c0_104, %c0_105] : memref<2x128xf32, #tpu.memory_space<vmem>>, vector<2x128xf32>
    tpu.vector_store %arg6[%c0_104, %c0_105], %230 {strides = array<i32>} : memref<2x128xf32, #tpu.memory_space<vmem>>, vector<2x128xf32>,
    %233 = arith.index_cast %c5_i32 : i32 to index
    %c0_106 = arith.constant 0 : index
    %c0_107 = arith.constant 0 : index
    %234 = vector.load %arg5[%233, %c0_106, %c0_107] : memref<8x2x128xf32, #tpu.memory_space<vmem>>, vector<1x2x128xf32>
    %235 = vector.shape_cast %234 : vector<1x2x128xf32> to vector<2x128xf32>
    %236 = vector.shape_cast %230 : vector<2x128xf32> to vector<1x2x128xf32>
    tpu.vector_store %arg5[%233, %c0_106, %c0_107], %236 {strides = array<i32>} : memref<8x2x128xf32, #tpu.memory_space<vmem>>, vector<1x2x128xf32>,
    %c6_i32 = arith.constant 6 : i32
    %237 = arith.index_cast %c6_i32 : i32 to index
    %c0_108 = arith.constant 0 : index
    %c0_109 = arith.constant 0 : index
    %238 = vector.load %arg2[%237, %c0_108, %c0_109] : memref<8x2x512xf32, #tpu.memory_space<vmem>>, vector<1x2x512xf32>
    %239 = vector.shape_cast %238 : vector<1x2x512xf32> to vector<2x512xf32>
    %c0_110 = arith.constant 0 : index
    %c0_111 = arith.constant 0 : index
    %240 = vector.load %arg6[%c0_110, %c0_111] : memref<2x128xf32, #tpu.memory_space<vmem>>, vector<2x128xf32>
    %c0_112 = arith.constant 0 : index
    %c0_113 = arith.constant 0 : index
    %241 = vector.load %arg4[%c0_112, %c0_113] : memref<128x512xf32, #tpu.memory_space<vmem>>, vector<128x512xf32>
    %cst_114 = arith.constant dense<0.000000e+00> : vector<2x512xf32>
    %242 = tpu.matmul %240, %241, %cst_114 {dimension_numbers = #tpu.dot_dimension_numbers<[1], [0], [0], [1], [0, 0, 1, 1], [], []>} : vector<2x128xf32>, vector<128x512xf32>, vector<2x512xf32> -> vector<2x512xf32>
    %243 = arith.addf %239, %242 : vector<2x512xf32>
    %244 = vector.extract_strided_slice %243 {offsets = [0, 0], sizes = [2, 128], strides = [1, 1]} : vector<2x512xf32> to vector<2x128xf32>
    %245 = arith.negf %244 : vector<2x128xf32>
    %246 = math.exp %245 : vector<2x128xf32>
    %cst_115 = arith.constant 1.000000e+00 : f32
    %247 = vector.broadcast %cst_115 : f32 to vector<2x128xf32>
    %248 = arith.addf %247, %246 : vector<2x128xf32>
    %249 = arith.divf %247, %248 : vector<2x128xf32>
    %250 = vector.extract_strided_slice %243 {offsets = [0, 128], sizes = [2, 128], strides = [1, 1]} : vector<2x512xf32> to vector<2x128xf32>
    %251 = arith.negf %250 : vector<2x128xf32>
    %252 = math.exp %251 : vector<2x128xf32>
    %cst_116 = arith.constant 1.000000e+00 : f32
    %253 = vector.broadcast %cst_116 : f32 to vector<2x128xf32>
    %254 = arith.addf %253, %252 : vector<2x128xf32>
    %255 = arith.divf %253, %254 : vector<2x128xf32>
    %256 = vector.extract_strided_slice %243 {offsets = [0, 256], sizes = [2, 128], strides = [1, 1]} : vector<2x512xf32> to vector<2x128xf32>
    %257 = math.tanh %256 : vector<2x128xf32>
    %258 = vector.extract_strided_slice %243 {offsets = [0, 384], sizes = [2, 128], strides = [1, 1]} : vector<2x512xf32> to vector<2x128xf32>
    %259 = arith.negf %258 : vector<2x128xf32>
    %260 = math.exp %259 : vector<2x128xf32>
    %cst_117 = arith.constant 1.000000e+00 : f32
    %261 = vector.broadcast %cst_117 : f32 to vector<2x128xf32>
    %262 = arith.addf %261, %260 : vector<2x128xf32>
    %263 = arith.divf %261, %262 : vector<2x128xf32>
    %c0_118 = arith.constant 0 : index
    %c0_119 = arith.constant 0 : index
    %264 = vector.load %arg7[%c0_118, %c0_119] : memref<2x128xf32, #tpu.memory_space<vmem>>, vector<2x128xf32>
    %265 = arith.mulf %255, %264 : vector<2x128xf32>
    %266 = arith.mulf %249, %257 : vector<2x128xf32>
    %267 = arith.addf %265, %266 : vector<2x128xf32>
    %268 = math.tanh %267 : vector<2x128xf32>
    %269 = arith.mulf %263, %268 : vector<2x128xf32>
    %c0_120 = arith.constant 0 : index
    %c0_121 = arith.constant 0 : index
    %270 = vector.load %arg7[%c0_120, %c0_121] : memref<2x128xf32, #tpu.memory_space<vmem>>, vector<2x128xf32>
    tpu.vector_store %arg7[%c0_120, %c0_121], %267 {strides = array<i32>} : memref<2x128xf32, #tpu.memory_space<vmem>>, vector<2x128xf32>,
    %c0_122 = arith.constant 0 : index
    %c0_123 = arith.constant 0 : index
    %271 = vector.load %arg6[%c0_122, %c0_123] : memref<2x128xf32, #tpu.memory_space<vmem>>, vector<2x128xf32>
    tpu.vector_store %arg6[%c0_122, %c0_123], %269 {strides = array<i32>} : memref<2x128xf32, #tpu.memory_space<vmem>>, vector<2x128xf32>,
    %272 = arith.index_cast %c6_i32 : i32 to index
    %c0_124 = arith.constant 0 : index
    %c0_125 = arith.constant 0 : index
    %273 = vector.load %arg5[%272, %c0_124, %c0_125] : memref<8x2x128xf32, #tpu.memory_space<vmem>>, vector<1x2x128xf32>
    %274 = vector.shape_cast %273 : vector<1x2x128xf32> to vector<2x128xf32>
    %275 = vector.shape_cast %269 : vector<2x128xf32> to vector<1x2x128xf32>
    tpu.vector_store %arg5[%272, %c0_124, %c0_125], %275 {strides = array<i32>} : memref<8x2x128xf32, #tpu.memory_space<vmem>>, vector<1x2x128xf32>,
    %c7_i32 = arith.constant 7 : i32
    %276 = arith.index_cast %c7_i32 : i32 to index
    %c0_126 = arith.constant 0 : index
    %c0_127 = arith.constant 0 : index
    %277 = vector.load %arg2[%276, %c0_126, %c0_127] : memref<8x2x512xf32, #tpu.memory_space<vmem>>, vector<1x2x512xf32>
    %278 = vector.shape_cast %277 : vector<1x2x512xf32> to vector<2x512xf32>
    %c0_128 = arith.constant 0 : index
    %c0_129 = arith.constant 0 : index
    %279 = vector.load %arg6[%c0_128, %c0_129] : memref<2x128xf32, #tpu.memory_space<vmem>>, vector<2x128xf32>
    %c0_130 = arith.constant 0 : index
    %c0_131 = arith.constant 0 : index
    %280 = vector.load %arg4[%c0_130, %c0_131] : memref<128x512xf32, #tpu.memory_space<vmem>>, vector<128x512xf32>
    %cst_132 = arith.constant dense<0.000000e+00> : vector<2x512xf32>
    %281 = tpu.matmul %279, %280, %cst_132 {dimension_numbers = #tpu.dot_dimension_numbers<[1], [0], [0], [1], [0, 0, 1, 1], [], []>} : vector<2x128xf32>, vector<128x512xf32>, vector<2x512xf32> -> vector<2x512xf32>
    %282 = arith.addf %278, %281 : vector<2x512xf32>
    %283 = vector.extract_strided_slice %282 {offsets = [0, 0], sizes = [2, 128], strides = [1, 1]} : vector<2x512xf32> to vector<2x128xf32>
    %284 = arith.negf %283 : vector<2x128xf32>
    %285 = math.exp %284 : vector<2x128xf32>
    %cst_133 = arith.constant 1.000000e+00 : f32
    %286 = vector.broadcast %cst_133 : f32 to vector<2x128xf32>
    %287 = arith.addf %286, %285 : vector<2x128xf32>
    %288 = arith.divf %286, %287 : vector<2x128xf32>
    %289 = vector.extract_strided_slice %282 {offsets = [0, 128], sizes = [2, 128], strides = [1, 1]} : vector<2x512xf32> to vector<2x128xf32>
    %290 = arith.negf %289 : vector<2x128xf32>
    %291 = math.exp %290 : vector<2x128xf32>
    %cst_134 = arith.constant 1.000000e+00 : f32
    %292 = vector.broadcast %cst_134 : f32 to vector<2x128xf32>
    %293 = arith.addf %292, %291 : vector<2x128xf32>
    %294 = arith.divf %292, %293 : vector<2x128xf32>
    %295 = vector.extract_strided_slice %282 {offsets = [0, 256], sizes = [2, 128], strides = [1, 1]} : vector<2x512xf32> to vector<2x128xf32>
    %296 = math.tanh %295 : vector<2x128xf32>
    %297 = vector.extract_strided_slice %282 {offsets = [0, 384], sizes = [2, 128], strides = [1, 1]} : vector<2x512xf32> to vector<2x128xf32>
    %298 = arith.negf %297 : vector<2x128xf32>
    %299 = math.exp %298 : vector<2x128xf32>
    %cst_135 = arith.constant 1.000000e+00 : f32
    %300 = vector.broadcast %cst_135 : f32 to vector<2x128xf32>
    %301 = arith.addf %300, %299 : vector<2x128xf32>
    %302 = arith.divf %300, %301 : vector<2x128xf32>
    %c0_136 = arith.constant 0 : index
    %c0_137 = arith.constant 0 : index
    %303 = vector.load %arg7[%c0_136, %c0_137] : memref<2x128xf32, #tpu.memory_space<vmem>>, vector<2x128xf32>
    %304 = arith.mulf %294, %303 : vector<2x128xf32>
    %305 = arith.mulf %288, %296 : vector<2x128xf32>
    %306 = arith.addf %304, %305 : vector<2x128xf32>
    %307 = math.tanh %306 : vector<2x128xf32>
    %308 = arith.mulf %302, %307 : vector<2x128xf32>
    %c0_138 = arith.constant 0 : index
    %c0_139 = arith.constant 0 : index
    %309 = vector.load %arg7[%c0_138, %c0_139] : memref<2x128xf32, #tpu.memory_space<vmem>>, vector<2x128xf32>
    tpu.vector_store %arg7[%c0_138, %c0_139], %306 {strides = array<i32>} : memref<2x128xf32, #tpu.memory_space<vmem>>, vector<2x128xf32>,
    %c0_140 = arith.constant 0 : index
    %c0_141 = arith.constant 0 : index
    %310 = vector.load %arg6[%c0_140, %c0_141] : memref<2x128xf32, #tpu.memory_space<vmem>>, vector<2x128xf32>
    tpu.vector_store %arg6[%c0_140, %c0_141], %308 {strides = array<i32>} : memref<2x128xf32, #tpu.memory_space<vmem>>, vector<2x128xf32>,
    %311 = arith.index_cast %c7_i32 : i32 to index
    %c0_142 = arith.constant 0 : index
    %c0_143 = arith.constant 0 : index
    %312 = vector.load %arg5[%311, %c0_142, %c0_143] : memref<8x2x128xf32, #tpu.memory_space<vmem>>, vector<1x2x128xf32>
    %313 = vector.shape_cast %312 : vector<1x2x128xf32> to vector<2x128xf32>
    %314 = vector.shape_cast %308 : vector<2x128xf32> to vector<1x2x128xf32>
    tpu.vector_store %arg5[%311, %c0_142, %c0_143], %314 {strides = array<i32>} : memref<8x2x128xf32, #tpu.memory_space<vmem>>, vector<1x2x128xf32>,
    %c8_i32 = arith.constant 8 : i32
    return
  }
  func.func @transform_0(%arg0: i32, %arg1: i32) -> (i32, i32, i32) {
    %c0_i32 = arith.constant 0 : i32
    %c0_i32_0 = arith.constant 0 : i32
    return %arg1, %arg0, %c0_i32 : i32, i32, i32
  }
  func.func @transform_1(%arg0: i32, %arg1: i32) -> (i32, i32) {
    %c0_i32 = arith.constant 0 : i32
    %c0_i32_0 = arith.constant 0 : i32
    return %arg0, %c0_i32 : i32, i32
  }
  func.func @transform_2(%arg0: i32, %arg1: i32) -> (i32, i32) {
    %c0_i32 = arith.constant 0 : i32
    %c0_i32_0 = arith.constant 0 : i32
    %c0_i32_1 = arith.constant 0 : i32
    return %c0_i32, %c0_i32_0 : i32, i32
  }
  func.func @transform_3(%arg0: i32, %arg1: i32) -> (i32, i32, i32) {
    %c0_i32 = arith.constant 0 : i32
    %c0_i32_0 = arith.constant 0 : i32
    return %arg1, %arg0, %c0_i32 : i32, i32, i32
  }
}

module attributes {stable_mosaic.version = 11 : i64} {
  func.func @_linear_kernel(%arg0: i32, %arg1: memref<16x128xf32, #tpu.memory_space<vmem>>, %arg2: memref<128x8xf32, #tpu.memory_space<vmem>>, %arg3: memref<1x8xf32, #tpu.memory_space<vmem>>, %arg4: memref<16x8xf32, #tpu.memory_space<vmem>>) attributes {dimension_semantics = [#tpu.dimension_semantics<parallel>], iteration_bounds = array<i64: 1>, scalar_prefetch = 0 : i64, scratch_operands = 0 : i64, tpu.core_type = #tpu.core_type<tc>, window_params = [{transform_indices = @transform_0, window_bounds = array<i64: 16, 128>}, {pipeline_mode = #tpu.pipeline_mode<synchronous>, transform_indices = @transform_1, window_bounds = array<i64: 128, 8>}, {pipeline_mode = #tpu.pipeline_mode<synchronous>, transform_indices = @transform_2, window_bounds = array<i64: 1, 8>}, {transform_indices = @transform_3, window_bounds = array<i64: 16, 8>}]} {
    %c0 = arith.constant 0 : index
    %c0_0 = arith.constant 0 : index
    %0 = vector.load %arg1[%c0, %c0_0] : memref<16x128xf32, #tpu.memory_space<vmem>>, vector<16x128xf32>
    %c0_1 = arith.constant 0 : index
    %c0_2 = arith.constant 0 : index
    %1 = vector.load %arg2[%c0_1, %c0_2] : memref<128x8xf32, #tpu.memory_space<vmem>>, vector<128x8xf32>
    %cst = arith.constant dense<0.000000e+00> : vector<16x8xf32>
    %2 = tpu.matmul %0, %1, %cst {dimension_numbers = #tpu.dot_dimension_numbers<[1], [0], [0], [1], [0, 0, 1, 1], [], []>} : vector<16x128xf32>, vector<128x8xf32>, vector<16x8xf32> -> vector<16x8xf32>
    %c0_3 = arith.constant 0 : index
    %c0_4 = arith.constant 0 : index
    %3 = vector.load %arg3[%c0_3, %c0_4] : memref<1x8xf32, #tpu.memory_space<vmem>>, vector<1x8xf32>
    %4 = vector.broadcast %3 : vector<1x8xf32> to vector<16x8xf32>
    %5 = arith.addf %2, %4 : vector<16x8xf32>
    %c0_5 = arith.constant 0 : index
    %c0_6 = arith.constant 0 : index
    %6 = vector.load %arg4[%c0_5, %c0_6] : memref<16x8xf32, #tpu.memory_space<vmem>>, vector<16x8xf32>
    tpu.vector_store %arg4[%c0_5, %c0_6], %5 {strides = array<i32>} : memref<16x8xf32, #tpu.memory_space<vmem>>, vector<16x8xf32>,
    return
  }
  func.func @transform_0(%arg0: i32) -> (i32, i32) {
    %c0_i32 = arith.constant 0 : i32
    %c0_i32_0 = arith.constant 0 : i32
    return %arg0, %c0_i32 : i32, i32
  }
  func.func @transform_1(%arg0: i32) -> (i32, i32) {
    %c0_i32 = arith.constant 0 : i32
    %c0_i32_0 = arith.constant 0 : i32
    %c0_i32_1 = arith.constant 0 : i32
    return %c0_i32, %c0_i32_0 : i32, i32
  }
  func.func @transform_2(%arg0: i32) -> (i32, i32) {
    %c0_i32 = arith.constant 0 : i32
    %c0_i32_0 = arith.constant 0 : i32
    %c0_i32_1 = arith.constant 0 : i32
    return %c0_i32, %c0_i32_0 : i32, i32
  }
  func.func @transform_3(%arg0: i32) -> (i32, i32) {
    %c0_i32 = arith.constant 0 : i32
    %c0_i32_0 = arith.constant 0 : i32
    return %arg0, %c0_i32 : i32, i32
  }
}

</mosaic_0001>

<bundles_post_ra>
// kernel: base_model_forward.7
= control target key start
LH: loop header
LB: loop body
LE: loop exit
PB: predicated region body
PF: predicated region fallthrough
CT: control target
= control target key end

     0   :  { %vm114_vm0 = vcmask 64512   ;;  %s290_s1 = inlined_call_operand.vmem [shape: f32[128,8], index: 1, kind: input, shape index: {}]   ;;  %s291_s0 = inlined_call_operand.vmem [shape: f32[16,128], index: 0, kind: input, shape index: {}]   ;;  %s292_s2 = inlined_call_operand.vmem [shape: f32[1,8], index: 2, kind: input, shape index: {}]   ;;  %s293_s3 = inlined_call_operand.vmem [shape: f32[16,8], index: 3, kind: output, shape index: {}]  }
   0x1   :  { %v16_v0 = vld [vmem:[%s290_s1] sm:$0xff]  ;;  %v17_v1 = vld [vmem:[%s290_s1 + $0x8] sm:$0xff]  ;;  %v18_v2 = vld [vmem:[%s290_s1 + $0x10] sm:$0xff] }
   0x2   :  { %v175_v3 = vpack.c.bf16 %v17_v1, %v16_v0  ;;  %v19_v4 = vld [vmem:[%s290_s1 + $0x18] sm:$0xff]  ;;  %v20_v6 = vld [vmem:[%s290_s1 + $0x20] sm:$0xff]  ;;  %v21_v7 = vld [vmem:[%s290_s1 + $0x28] sm:$0xff] }
   0x3   :  { %v179_v5 = vpack.c.bf16 %v19_v4, %v18_v2  ;;  %v183_v8 = vpack.c.bf16 %v21_v7, %v20_v6  ;;  %v14_v9 = vld [vmem:[%s291_s0] sm:$0xff]  ;;  %v22_v10 = vld [vmem:[%s290_s1 + $0x30] sm:$0xff]  ;;  %v23_v11 = vld [vmem:[%s290_s1 + $0x38] sm:$0xff] }
   0x4   :  { %176 = vmatprep.subr.bf16.mxu0 %v175_v3  ;;  %172 = vmatprep.mubr.f32.mxu0 %v14_v9  ;;  %v187_v12 = vpack.c.bf16 %v23_v11, %v22_v10  ;;  %v24_v13 = vld [vmem:[%s290_s1 + $0x40] sm:$0xff]  ;;  %v25_v14 = vld [vmem:[%s290_s1 + $0x48] sm:$0xff]  ;;  %v26_v16 = vld [vmem:[%s290_s1 + $0x50] sm:$0xff] }
   0x5   :  { %178 = vmatpush3.bf16.msra.mxu0 %v175_v3  ;;  %v191_v15 = vpack.c.bf16 %v25_v14, %v24_v13  ;;  %v27_v17 = vld [vmem:[%s290_s1 + $0x58] sm:$0xff]  ;;  %v28_v19 = vld [vmem:[%s290_s1 + $0x60] sm:$0xff]  ;;  %v29_v20 = vld [vmem:[%s290_s1 + $0x68] sm:$0xff] }
   0x6   :  { %180 = vmatprep.subr.bf16.mxu0 %v179_v5  ;;  %v195_v18 = vpack.c.bf16 %v27_v17, %v26_v16  ;;  %v199_v21 = vpack.c.bf16 %v29_v20, %v28_v19  ;;  %v30_v22 = vld [vmem:[%s290_s1 + $0x70] sm:$0xff]  ;;  %v31_v23 = vld [vmem:[%s290_s1 + $0x78] sm:$0xff]  ;;  %v15_v25 = vld [vmem:[%s291_s0 + $0x8] sm:$0xff] }
   0x7   :  { %v203_v24 = vpack.c.bf16 %v31_v23, %v30_v22  ;;  %v121_v26 = vld [vmem:[%s292_s2] ss:$0 sm:$0xff] }
   0x9   :  { %182 = vmatpush3.bf16.msra.mxu0 %v179_v5 }
   0xa   :  { %184 = vmatprep.subr.bf16.mxu0 %v183_v8 }
   0xd   :  { %186 = vmatpush3.bf16.msra.mxu0 %v183_v8 }
   0xe   :  { %188 = vmatprep.subr.bf16.mxu0 %v187_v12 }
  0x11   :  { %190 = vmatpush3.bf16.msra.mxu0 %v187_v12 }
  0x12   :  { %192 = vmatprep.subr.bf16.mxu0 %v191_v15 }
  0x15   :  { %194 = vmatpush3.bf16.msra.mxu0 %v191_v15 }
  0x16   :  { %196 = vmatprep.subr.bf16.mxu0 %v195_v18 }
  0x19   :  { %198 = vmatpush3.bf16.msra.mxu0 %v195_v18 }
  0x1a   :  { %200 = vmatprep.subr.bf16.mxu0 %v199_v21 }
  0x1d   :  { %202 = vmatpush3.bf16.msra.mxu0 %v199_v21 }
  0x1e   :  { %204 = vmatprep.subr.bf16.mxu0 %v203_v24 }
  0x21   :  { %206 = vmatpush3.bf16.msra.mxu0 %v203_v24 }
  0x24   :  { %173 = vmatmul.mubr.f32.vlgmr.msra.gmra.mrb[0].mxu0 %v15_v25 }
  0xf7   :  { %v174_v27 = vpop.f32.mrb[0].mxu0 }
  0xf8   :  { %v111_v28 = vadd.f32 %v174_v27, %v121_v26  ;;  %v105_v29 = vpop.f32.mrb[1].mxu0 }
  0xf9   :  { %v106_v30 = vadd.f32 %v121_v26, %v105_v29 }
  0xfa   :  { %116 = vst.msk [vmem:[%s293_s3 + $0x8] sm:$0xff] %vm114_vm0, %v111_v28 }
  0xfb   :  { %115 = vst.msk [vmem:[%s293_s3] sm:$0xff] %vm114_vm0, %v106_v30 }

// kernel: base_model_forward.5
= control target key start
LH: loop header
LB: loop body
LE: loop exit
PB: predicated region body
PF: predicated region fallthrough
CT: control target
= control target key end

     0   :  { %v232_v3 = vmov 0.0   ;;  %vm46_vm0 = vcmask 130048   ;;  %v26_v15 = vlaneseq  ;;  %s310_s1 = inlined_call_operand.vmem [shape: f32[16,512], index: 1, kind: input, shape index: {}]   ;;  %s311_s0 = inlined_call_operand.vmem [shape: f32[16,16], index: 0, kind: input, shape index: {}]   ;;  %s312_s2 = inlined_call_operand.vmem [shape: f32[1,512], index: 2, kind: input, shape index: {}]   ;;  %s313_s3 = inlined_call_operand.vmem [shape: f32[16,512], index: 3, kind: output, shape index: {}]  }
   0x1   :  { %v17_v0 = vld [vmem:[%s310_s1 + $0x8] sm:$0xff]  ;;  %v19_v2 = vld [vmem:[%s310_s1 + $0x18] sm:$0xff]  ;;  %117 = vmatprep.mubr.f32.mxu0 %v232_v3  ;;  %194 = vmatprep.mubr.f32.mxu1 %v232_v3  ;;  %v16_v6 = vld [vmem:[%s310_s1] sm:$0xff] }
   0x2   :  { %v21_v1 = vld [vmem:[%s310_s1 + $0x28] sm:$0xff]  ;;  %v23_v5 = vld [vmem:[%s310_s1 + $0x38] sm:$0xff]  ;;  %v20_v7 = vld [vmem:[%s310_s1 + $0x20] sm:$0xff]  ;;  %v27_v16 = vshrl.u32 %v26_v15, 7 }
   0x3   :  { %v223_v4 = vpack.c.bf16 %v21_v1, %v17_v0  ;;  %v227_v8 = vpack.c.bf16 %v23_v5, %v19_v2  ;;  %v225_v9 = vpack.c.bf16 %v20_v7, %v16_v6  ;;  %v18_v10 = vld [vmem:[%s310_s1 + $0x10] sm:$0xff]  ;;  %v14_v13 = vld [vmem:[%s311_s0] sm:$0xff]  ;;  %v15_v14 = vld [vmem:[%s311_s0 + $0x8] sm:$0xff] }
   0x4   :  { %v22_v11 = vld [vmem:[%s310_s1 + $0x30] sm:$0xff]  ;;  %v28_v17 = vsub.s32 0, %v27_v16  ;;  %v24_v18 = vld [vmem:[%s312_s2] sm:$0xf]  ;;  %v36_v19 = vsub.s32 2, %v27_v16  ;;  %v32_v20 = vsub.s32 1, %v27_v16 }
   0x5   :  { %224 = vmatprep.subr.bf16.mxu0 %v223_v4  ;;  %v229_v12 = vpack.c.bf16 %v22_v11, %v18_v10  ;;  %228 = vmatprep.subr.bf16.mxu1 %v227_v8  ;;  %v40_v21 = vsub.s32 3, %v27_v16 }
   0x6   :  { %226 = vmatpush1.bf16.msra.mxu0 %v225_v9  ;;  %v29_v22 = vrot.slane %v24_v18, %v28_v17  ;;  %v37_v23 = vrot.slane %v24_v18, %v36_v19  ;;  %v33_v24 = vrot.slane %v24_v18, %v32_v20 }
   0x7   :  { %230 = vmatpush1.bf16.msra.mxu1 %v229_v12  ;;  %v41_v25 = vrot.slane %v24_v18, %v40_v21 }
   0x9   :  { %219 = vmatmul.mubr.msk.f32.vlgmr.msra.gmra.mrb[0].mxu0 %vm46_vm0, %v14_v13 }
   0xa   :  { %221 = vmatmul.mubr.msk.f32.vlgmr.msra.gmra.mrb[0].mxu1 %vm46_vm0, %v14_v13  ;;  %123 = vmatprep.mubr.f32.mxu0 %v232_v3 }
   0xb   :  { %200 = vmatprep.mubr.f32.mxu1 %v232_v3 }
   0xd   :  { %220 = vmatmul.mubr.msk.f32.gmra.mrb[2].mxu0 %vm46_vm0, %v15_v14 }
   0xe   :  { %222 = vmatmul.mubr.msk.f32.gmra.mrb[2].mxu1 %vm46_vm0, %v15_v14 }
  0xdc   :  { %v119_v26 = vpop.f32.mrb[0].mxu0 }
  0xdd   :  { %v120_v27 = vadd.f32 %v119_v26, %v29_v22  ;;  %v196_v28 = vpop.f32.mrb[0].mxu1  ;;  %v121_v29 = vpop.f32.mrb[1].mxu0 }
  0xde   :  { %v197_v30 = vadd.f32 %v196_v28, %v37_v23  ;;  %v122_v31 = vadd.f32 %v121_v29, %v33_v24  ;;  %v198_v32 = vpop.f32.mrb[1].mxu1 }
  0xdf   :  { %207 = vst [vmem:[%s313_s3] sm:$0xff] %v120_v27  ;;  %v199_v33 = vadd.f32 %v198_v32, %v41_v25 }
  0xe0   :  { %209 = vst [vmem:[%s313_s3 + $0x10] sm:$0xff] %v197_v30  ;;  %208 = vst [vmem:[%s313_s3 + $0x8] sm:$0xff] %v122_v31  ;;  %v125_v34 = vpop.f32.mrb[2].mxu0 }
  0xe1   :  { %210 = vst [vmem:[%s313_s3 + $0x18] sm:$0xff] %v199_v33  ;;  %v126_v35 = vadd.f32 %v125_v34, %v29_v22  ;;  %v202_v36 = vpop.f32.mrb[2].mxu1  ;;  %v127_v37 = vpop.f32.mrb[3].mxu0 }
  0xe2   :  { %v203_v38 = vadd.f32 %v202_v36, %v37_v23  ;;  %v128_v39 = vadd.f32 %v127_v37, %v33_v24  ;;  %v204_v40 = vpop.f32.mrb[3].mxu1 }
  0xe3   :  { %211 = vst [vmem:[%s313_s3 + $0x20] sm:$0xff] %v126_v35  ;;  %v205_v41 = vadd.f32 %v204_v40, %v41_v25 }
  0xe4   :  { %213 = vst [vmem:[%s313_s3 + $0x30] sm:$0xff] %v203_v38  ;;  %212 = vst [vmem:[%s313_s3 + $0x28] sm:$0xff] %v128_v39 }
  0xe5   :  { %214 = vst [vmem:[%s313_s3 + $0x38] sm:$0xff] %v205_v41 }

// kernel: base_model_forward.4
= control target key start
LH: loop header
LB: loop body
LE: loop exit
PB: predicated region body
PF: predicated region fallthrough
CT: control target
= control target key end

     0   :  { %v121_v0 = vmov 0.0|0.0   ;;  %vm122_vm0 = vmmov 0   ;;  %v123_v3 = vmov 0.0   ;;  %vm24_vm1 = vcmask 130048   ;;  %s159_s1 = inlined_call_operand.vmem [shape: f32[16,128], index: 1, kind: input, shape index: {}]   ;;  %s160_s0 = inlined_call_operand.vmem [shape: f32[8,16], index: 0, kind: input, shape index: {}]   ;;  %s161_s2 = inlined_call_operand.vmem [shape: f32[1,128], index: 2, kind: input, shape index: {}]   ;;  %s162_s3 = inlined_call_operand.vmem [shape: f32[8,128], index: 3, kind: output, shape index: {}]  }
   0x1   :  { %115 = vmatprep.subr.bf16.mxu0 %v121_v0  ;;  %v15_v1 = vld [vmem:[%s159_s1] sm:$0xff]  ;;  %v16_v2 = vld [vmem:[%s159_s1 + $0x8] sm:$0xff]  ;;  %112 = vmatprep.mubr.msk.f32.mxu0 %vm122_vm0, %v123_v3 }
   0x2   :  { %v116_v4 = vpack.c.bf16 %v16_v2, %v15_v1  ;;  %v14_v5 = vld [vmem:[%s160_s0] sm:$0xff] }
   0x3   :  { %v103_v6 = vld [vmem:[%s161_s2] ss:$0 sm:$0xff] }
   0x4   :  { %117 = vmatpush3.bf16.msra.mxu0 %v116_v4 }
   0x7   :  { %113 = vmatmul.mubr.msk.f32.vlgmr.msra.gmra.mrb[0].mxu0 %vm24_vm1, %v14_v5 }
  0xda   :  { %v94_v7 = vpop.f32.mrb[0].mxu0 }
  0xdb   :  { %v95_v8 = vadd.f32 %v103_v6, %v94_v7  ;;  %v114_v9 = vpop.f32.mrb[1].mxu0 }
  0xdd   :  { %98 = vst [vmem:[%s162_s3] sm:$0xff] %v95_v8 }

// kernel: base_model_forward.6
= control target key start
LH: loop header
LB: loop body
LE: loop exit
PB: predicated region body
PF: predicated region fallthrough
CT: control target
= control target key end

     0   :  { %v2848_v3 = vmov 0.0   ;;  %s3886_s2 = inlined_call_operand.vmem [shape: f32[128,512], index: 2, kind: input, shape index: {}]   ;;  %s3887_s1 = inlined_call_operand.vmem [shape: f32[2,128], index: 1, kind: input, shape index: {}]   ;;  %s3888_s0 = inlined_call_operand.vmem [shape: f32[8,2,512], index: 0, kind: input, shape index: {}]   ;;  %s3889_s3 = inlined_call_operand.vmem [shape: f32[8,2,128], index: 3, kind: output, shape index: {}]  }
   0x1   :  { %v25_v0 = vld [vmem:[%s3886_s2 + $0x8] sm:$0xff]  ;;  %v27_v2 = vld [vmem:[%s3886_s2 + $0x18] sm:$0xff]  ;;  %152 = vmatprep.mubr.f32.mxu0 %v2848_v3  ;;  %223 = vmatprep.mubr.f32.mxu1 %v2848_v3  ;;  %v24_v6 = vld [vmem:[%s3886_s2] sm:$0xff] }
   0x2   :  { %v29_v1 = vld [vmem:[%s3886_s2 + $0x28] sm:$0xff]  ;;  %v31_v5 = vld [vmem:[%s3886_s2 + $0x38] sm:$0xff]  ;;  %v28_v7 = vld [vmem:[%s3886_s2 + $0x20] sm:$0xff] }
   0x3   :  { %v2881_v4 = vpack.c.bf16 %v29_v1, %v25_v0  ;;  %v2892_v8 = vpack.c.bf16 %v31_v5, %v27_v2  ;;  %v2894_v9 = vpack.c.bf16 %v28_v7, %v24_v6  ;;  %v26_v10 = vld [vmem:[%s3886_s2 + $0x10] sm:$0xff]  ;;  %v33_v12 = vld [vmem:[%s3886_s2 + $0x48] sm:$0xff]  ;;  %v35_v15 = vld [vmem:[%s3886_s2 + $0x58] sm:$0xff] }
   0x4   :  { %v30_v11 = vld [vmem:[%s3886_s2 + $0x30] sm:$0xff]  ;;  %v37_v14 = vld [vmem:[%s3886_s2 + $0x68] sm:$0xff]  ;;  %v39_v16 = vld [vmem:[%s3886_s2 + $0x78] sm:$0xff] }
   0x5   :  { %2207 = vmatprep.subr.bf16.mxu0 %v2881_v4  ;;  %v2906_v13 = vpack.c.bf16 %v30_v11, %v26_v10  ;;  %2239 = vmatprep.subr.bf16.mxu1 %v2892_v8  ;;  %v2919_v17 = vpack.c.bf16 %v37_v14, %v33_v12  ;;  %v2921_v18 = vpack.c.bf16 %v39_v16, %v35_v15  ;;  %v32_v19 = vld [vmem:[%s3886_s2 + $0x40] sm:$0xff]  ;;  %v34_v21 = vld [vmem:[%s3886_s2 + $0x50] sm:$0xff]  ;;  %v41_v24 = vld [vmem:[%s3886_s2 + $0x88] sm:$0xff] }
   0x6   :  { %2209 = vmatpush1.bf16.msra.mxu0 %v2894_v9  ;;  %v36_v20 = vld [vmem:[%s3886_s2 + $0x60] sm:$0xff]  ;;  %v38_v23 = vld [vmem:[%s3886_s2 + $0x70] sm:$0xff]  ;;  %v45_v25 = vld [vmem:[%s3886_s2 + $0xa8] sm:$0xff] }
   0x7   :  { %2241 = vmatpush1.bf16.msra.mxu1 %v2906_v13  ;;  %v2933_v22 = vpack.c.bf16 %v36_v20, %v32_v19  ;;  %2211 = vmatprep.subr.bf16.mxu0 %v2919_v17  ;;  %v2946_v26 = vpack.c.bf16 %v38_v23, %v34_v21  ;;  %v2948_v27 = vpack.c.bf16 %v45_v25, %v41_v24  ;;  %v43_v28 = vld [vmem:[%s3886_s2 + $0x98] sm:$0xff]  ;;  %v40_v30 = vld [vmem:[%s3886_s2 + $0x80] sm:$0xff]  ;;  %v42_v33 = vld [vmem:[%s3886_s2 + $0x90] sm:$0xff] }
   0x8   :  { %2243 = vmatprep.subr.bf16.mxu1 %v2921_v18  ;;  %v47_v29 = vld [vmem:[%s3886_s2 + $0xb8] sm:$0xff]  ;;  %v44_v32 = vld [vmem:[%s3886_s2 + $0xa0] sm:$0xff]  ;;  %v46_v34 = vld [vmem:[%s3886_s2 + $0xb0] sm:$0xff] }
   0x9   :  { %v2959_v31 = vpack.c.bf16 %v47_v29, %v43_v28  ;;  %v2971_v35 = vpack.c.bf16 %v44_v32, %v40_v30  ;;  %v49_v36 = vld [vmem:[%s3886_s2 + $0xc8] sm:$0xff]  ;;  %v51_v38 = vld [vmem:[%s3886_s2 + $0xd8] sm:$0xff]  ;;  %v2984_v39 = vpack.c.bf16 %v46_v34, %v42_v33  ;;  %v48_v42 = vld [vmem:[%s3886_s2 + $0xc0] sm:$0xff] }
   0xa   :  { %2213 = vmatpush1.bf16.msra.mxu0 %v2933_v22  ;;  %v53_v37 = vld [vmem:[%s3886_s2 + $0xe8] sm:$0xff]  ;;  %v55_v41 = vld [vmem:[%s3886_s2 + $0xf8] sm:$0xff]  ;;  %v52_v43 = vld [vmem:[%s3886_s2 + $0xe0] sm:$0xff] }
   0xb   :  { %2245 = vmatpush1.bf16.msra.mxu1 %v2946_v26  ;;  %2215 = vmatprep.subr.bf16.mxu0 %v2948_v27  ;;  %v2986_v40 = vpack.c.bf16 %v53_v37, %v49_v36  ;;  %v2998_v44 = vpack.c.bf16 %v55_v41, %v51_v38  ;;  %v50_v45 = vld [vmem:[%s3886_s2 + $0xd0] sm:$0xff]  ;;  %v57_v47 = vld [vmem:[%s3886_s2 + $0x108] sm:$0xff]  ;;  %v59_v49 = vld [vmem:[%s3886_s2 + $0x118] sm:$0xff]  ;;  %v3019_v51 = vpack.c.bf16 %v52_v43, %v48_v42 }
   0xc   :  { %2247 = vmatprep.subr.bf16.mxu1 %v2959_v31  ;;  %v54_v46 = vld [vmem:[%s3886_s2 + $0xf0] sm:$0xff]  ;;  %v61_v48 = vld [vmem:[%s3886_s2 + $0x128] sm:$0xff]  ;;  %v63_v50 = vld [vmem:[%s3886_s2 + $0x138] sm:$0xff] }
   0xd   :  { %v3023_v52 = vpack.c.bf16 %v54_v46, %v50_v45  ;;  %v3025_v53 = vpack.c.bf16 %v61_v48, %v57_v47  ;;  %v56_v54 = vld [vmem:[%s3886_s2 + $0x100] sm:$0xff]  ;;  %v58_v56 = vld [vmem:[%s3886_s2 + $0x110] sm:$0xff]  ;;  %v3037_v57 = vpack.c.bf16 %v63_v50, %v59_v49  ;;  %v65_v59 = vld [vmem:[%s3886_s2 + $0x148] sm:$0xff] }
   0xe   :  { %2217 = vmatpush1.bf16.msra.mxu0 %v2971_v35  ;;  %v60_v55 = vld [vmem:[%s3886_s2 + $0x120] sm:$0xff]  ;;  %v62_v58 = vld [vmem:[%s3886_s2 + $0x130] sm:$0xff]  ;;  %v69_v60 = vld [vmem:[%s3886_s2 + $0x168] sm:$0xff] }
   0xf   :  { %2249 = vmatpush1.bf16.msra.mxu1 %v2984_v39  ;;  %2219 = vmatprep.subr.bf16.mxu0 %v2986_v40  ;;  %v67_v61 = vld [vmem:[%s3886_s2 + $0x158] sm:$0xff]  ;;  %v3055_v63 = vpack.c.bf16 %v60_v55, %v56_v54  ;;  %v3059_v0 = vpack.c.bf16 %v62_v58, %v58_v56  ;;  %v3061_v1 = vpack.c.bf16 %v69_v60, %v65_v59  ;;  %v64_v2 = vld [vmem:[%s3886_s2 + $0x140] sm:$0xff]  ;;  %v66_v6 = vld [vmem:[%s3886_s2 + $0x150] sm:$0xff]  ;;  %v2849_v54 = vmov 1983009808  }
  0x10   :  { %2251 = vmatprep.subr.bf16.mxu1 %v2998_v44  ;;  %v71_v62 = vld [vmem:[%s3886_s2 + $0x178] sm:$0xff]  ;;  %v68_v5 = vld [vmem:[%s3886_s2 + $0x160] sm:$0xff]  ;;  %v70_v10 = vld [vmem:[%s3886_s2 + $0x170] sm:$0xff]  ;;  %v237_v55 = vunpack.c.l.s4 %v2849_v54  ;;  %v239_v56 = vlaneseq }
  0x11   :  { %v3073_v7 = vpack.c.bf16 %v71_v62, %v67_v61  ;;  %v73_v11 = vld [vmem:[%s3886_s2 + $0x188] sm:$0xff]  ;;  %v75_v14 = vld [vmem:[%s3886_s2 + $0x198] sm:$0xff]  ;;  %v3091_v16 = vpack.c.bf16 %v68_v5, %v64_v2  ;;  %v72_v19 = vld [vmem:[%s3886_s2 + $0x180] sm:$0xff]  ;;  %v3098_v20 = vpack.c.bf16 %v70_v10, %v66_v6 }
  0x12   :  { %2221 = vmatpush1.bf16.msra.mxu0 %v3019_v51  ;;  %v77_v12 = vld [vmem:[%s3886_s2 + $0x1a8] sm:$0xff]  ;;  %v79_v15 = vld [vmem:[%s3886_s2 + $0x1b8] sm:$0xff]  ;;  %v76_v23 = vld [vmem:[%s3886_s2 + $0x1a0] sm:$0xff]  ;;  %v238_v58 = vunpack.c.0.s8 %v237_v55  ;;  %v240_v59 = vshrl.u32 %v239_v56, 7 }
  0x13   :  { %2253 = vmatpush1.bf16.msra.mxu1 %v3023_v52  ;;  %2223 = vmatprep.subr.bf16.mxu0 %v3025_v53  ;;  %v3100_v21 = vpack.c.bf16 %v77_v12, %v73_v11  ;;  %v74_v24 = vld [vmem:[%s3886_s2 + $0x190] sm:$0xff]  ;;  %v18_v25 = vld [vmem:[%s3887_s1] sm:$0x3]  ;;  %v3112_v28 = vpack.c.bf16 %v79_v15, %v75_v14  ;;  %v81_v30 = vld [vmem:[%s3886_s2 + $0x1c8] sm:$0xff]  ;;  %v3130_v36 = vpack.c.bf16 %v76_v23, %v72_v19 }
  0x14   :  { %2255 = vmatprep.subr.bf16.mxu1 %v3037_v57  ;;  %v78_v29 = vld [vmem:[%s3886_s2 + $0x1b0] sm:$0xff]  ;;  %v85_v32 = vld [vmem:[%s3886_s2 + $0x1e8] sm:$0xff]  ;;  %19 = vst [vmem:[#allocation2] sm:$0x3] %v18_v25  ;;  %v83_v33 = vld [vmem:[%s3886_s2 + $0x1d8] sm:$0xff]  ;;  %v3202_v61 = vsub.s32 %v238_v58, %v240_v59 }
  0x15   :  { %v87_v34 = vld [vmem:[%s3886_s2 + $0x1f8] sm:$0xff]  ;;  %v3134_v37 = vpack.c.bf16 %v78_v29, %v74_v24  ;;  %v3136_v38 = vpack.c.bf16 %v85_v32, %v81_v30  ;;  %v80_v41 = vld [vmem:[%s3886_s2 + $0x1c0] sm:$0xff]  ;;  %v82_v45 = vld [vmem:[%s3886_s2 + $0x1d0] sm:$0xff] }
  0x16   :  { %2225 = vmatpush1.bf16.msra.mxu0 %v3055_v63  ;;  %v84_v42 = vld [vmem:[%s3886_s2 + $0x1e0] sm:$0xff]  ;;  %v3145_v43 = vpack.c.bf16 %v87_v34, %v83_v33  ;;  %v86_v46 = vld [vmem:[%s3886_s2 + $0x1f0] sm:$0xff] }
  0x17   :  { %2257 = vmatpush1.bf16.msra.mxu1 %v3059_v0  ;;  %2227 = vmatprep.subr.bf16.mxu0 %v3061_v1  ;;  %v3154_v47 = vpack.c.bf16 %v84_v42, %v80_v41  ;;  %v3158_v48 = vpack.c.bf16 %v86_v46, %v82_v45  ;;  %v20_v50 = vld [vmem:[%s3887_s1] sm:$0x3] }
  0x18   :  { %2259 = vmatprep.subr.bf16.mxu1 %v3073_v7  ;;  %21 = vst [vmem:[#allocation3] sm:$0x3] %v20_v50  ;;  %v22_v11 = vld [vmem:[%s3888_s0] sm:$0xff] }
  0x1a   :  { %2229 = vmatpush1.bf16.msra.mxu0 %v3091_v16 }
  0x1b   :  { %2261 = vmatpush1.bf16.msra.mxu1 %v3098_v20  ;;  %2231 = vmatprep.subr.bf16.mxu0 %v3100_v21  ;;  %v23_v49 = vld [vmem:[#allocation2] sm:$0x3] }
  0x1c   :  { %2263 = vmatprep.subr.bf16.mxu1 %v3112_v28 }
  0x1e   :  { %2233 = vmatpush1.bf16.msra.mxu0 %v3130_v36 }
  0x1f   :  { %2265 = vmatpush1.bf16.msra.mxu1 %v3134_v37  ;;  %2235 = vmatprep.subr.bf16.mxu0 %v3136_v38  ;;  %v279_v45 = vld [vmem:[#allocation3] sm:$0x3] }
  0x20   :  { %2267 = vmatprep.subr.bf16.mxu1 %v3145_v43 }
  0x22   :  { %2237 = vmatpush1.bf16.msra.mxu0 %v3154_v47 }
  0x23   :  { %2269 = vmatpush1.bf16.msra.mxu1 %v3158_v48  ;;  %2271 = vmatprep.subr.bf16.mxu0 %v2881_v4 }
  0x24   :  { %2303 = vmatprep.subr.bf16.mxu1 %v2892_v8 }
  0x25   :  { %153 = vmatmul.mubr.f32.vlgmr.msra.gmra.mrb[0].mxu0 %v23_v49 }
  0x26   :  { %224 = vmatmul.mubr.f32.vlgmr.msra.gmra.mrb[0].mxu1 %v23_v49  ;;  %2273 = vmatpush1.bf16.msra.mxu0 %v2894_v9 }
  0x27   :  { %2305 = vmatpush1.bf16.msra.mxu1 %v2906_v13  ;;  %2275 = vmatprep.subr.bf16.mxu0 %v2919_v17 }
  0x28   :  { %2307 = vmatprep.subr.bf16.mxu1 %v2921_v18  ;;  %419 = vmatprep.mubr.f32.mxu0 %v2848_v3 }
  0x29   :  { %490 = vmatprep.mubr.f32.mxu1 %v2848_v3 }
  0x2a   :  { %2277 = vmatpush1.bf16.msra.mxu0 %v2933_v22 }
  0x2b   :  { %2309 = vmatpush1.bf16.msra.mxu1 %v2946_v26  ;;  %2279 = vmatprep.subr.bf16.mxu0 %v2948_v27 }
  0x2c   :  { %2311 = vmatprep.subr.bf16.mxu1 %v2959_v31 }
  0x2e   :  { %2281 = vmatpush1.bf16.msra.mxu0 %v2971_v35 }
  0x2f   :  { %2313 = vmatpush1.bf16.msra.mxu1 %v2984_v39  ;;  %2283 = vmatprep.subr.bf16.mxu0 %v2986_v40 }
  0x30   :  { %2315 = vmatprep.subr.bf16.mxu1 %v2998_v44 }
  0x32   :  { %2285 = vmatpush1.bf16.msra.mxu0 %v3019_v51 }
  0x33   :  { %2317 = vmatpush1.bf16.msra.mxu1 %v3023_v52  ;;  %2287 = vmatprep.subr.bf16.mxu0 %v3025_v53 }
  0x34   :  { %2319 = vmatprep.subr.bf16.mxu1 %v3037_v57 }
  0x36   :  { %2289 = vmatpush1.bf16.msra.mxu0 %v3055_v63 }
  0x37   :  { %2321 = vmatpush1.bf16.msra.mxu1 %v3059_v0  ;;  %2291 = vmatprep.subr.bf16.mxu0 %v3061_v1 }
  0x38   :  { %2323 = vmatprep.subr.bf16.mxu1 %v3073_v7 }
  0x3a   :  { %2293 = vmatpush1.bf16.msra.mxu0 %v3091_v16 }
  0x3b   :  { %2325 = vmatpush1.bf16.msra.mxu1 %v3098_v20  ;;  %2295 = vmatprep.subr.bf16.mxu0 %v3100_v21 }
  0x3c   :  { %2327 = vmatprep.subr.bf16.mxu1 %v3112_v28 }
  0x3e   :  { %2297 = vmatpush1.bf16.msra.mxu0 %v3130_v36 }
  0x3f   :  { %2329 = vmatpush1.bf16.msra.mxu1 %v3134_v37  ;;  %2299 = vmatprep.subr.bf16.mxu0 %v3136_v38 }
  0x40   :  { %2331 = vmatprep.subr.bf16.mxu1 %v3145_v43 }
  0x42   :  { %2301 = vmatpush1.bf16.msra.mxu0 %v3154_v47 }
  0x43   :  { %2333 = vmatpush1.bf16.msra.mxu1 %v3158_v48  ;;  %2335 = vmatprep.subr.bf16.mxu0 %v2881_v4 }
  0x44   :  { %2367 = vmatprep.subr.bf16.mxu1 %v2892_v8 }
  0xf8   :  { %v154_v60 = vpop.f32.mrb[0].mxu0 }
  0xf9   :  { %v225_v62 = vpop.f32.mrb[0].mxu1  ;;  %v156_v2 = vpop.f32.mrb[1].mxu0 }
  0xfa   :  { %v234_v5 = vcombine.low %v154_v60, %v156_v2  ;;  %v227_v6 = vpop.f32.mrb[1].mxu1 }
  0xfb   :  { %v235_v4 = vcombine.low %v225_v62, %v227_v6 }
  0xfc   :  { %v242_v8 = vrot.slane %v234_v5, %v3202_v61 }
  0xfd   :  { %v249_v10 = vrot.slane %v235_v4, %v3202_v61 }
  0xff   :  { %v250_v12 = vcombine.low %v242_v8, %v249_v10  ;;  %v828_v8 = vld [vmem:[%s3886_s2 + $0x8] sm:$0xff] }
 0x100   :  { %v832_v10 = vld [vmem:[%s3886_s2 + $0x28] sm:$0xff] }
 0x101   :  { %v252_v14 = vadd.f32 %v250_v12, %v22_v11  ;;  %v830_v11 = vld [vmem:[%s3886_s2 + $0x18] sm:$0xff]  ;;  %v3263_v12 = vpack.c.bf16 %v832_v10, %v828_v8 }
 0x102   :  { %v870_v8 = vld [vmem:[%s3886_s2 + $0x158] sm:$0xff] }
 0x103   :  { %v2168_v15 = vmul.f32 -1.442695, %v252_v14  ;;  %v260_v19 = vrot.slane %v252_v14, 2  ;;  %v271_v24 = vrot.slane %v252_v14, 6  ;;  %v268_v30 = vrot.slane %v252_v14, 4  ;;  %v834_v14 = vld [vmem:[%s3886_s2 + $0x38] sm:$0xff] }
 0x105   :  { %2720 = vpow2.f32 %v2168_v15  ;;  %v2169_v23 = vmul.f32 -1.442695, %v260_v19  ;;  %v2170_v25 = vmul.f32 -1.442695, %v271_v24  ;;  %v827_v15 = vld [vmem:[%s3886_s2] sm:$0xff] }
 0x106   :  { %v831_v19 = vld [vmem:[%s3886_s2 + $0x20] sm:$0xff] }
 0x107   :  { %2722 = vpow2.f32 %v2169_v23  ;;  %v3274_v23 = vpack.c.bf16 %v834_v14, %v830_v11  ;;  %v3276_v24 = vpack.c.bf16 %v831_v19, %v827_v15  ;;  %v874_v11 = vld [vmem:[%s3886_s2 + $0x178] sm:$0xff]  ;;  %v867_v14 = vld [vmem:[%s3886_s2 + $0x140] sm:$0xff] }
 0x108   :  { %2724 = vpow2.f32 %v2170_v25  ;;  %v829_v25 = vld [vmem:[%s3886_s2 + $0x10] sm:$0xff]  ;;  %v871_v15 = vld [vmem:[%s3886_s2 + $0x160] sm:$0xff]  ;;  %v3454_v19 = vpack.c.bf16 %v874_v11, %v870_v8 }
 0x109   :  { %v2176_v8 = vld [vmem:[%s3888_s0 + $0x10] sm:$0xff] }
 0x10f   :  { %v2721_v29 = vpop.eup %2720 }
 0x110   :  { %v256_v32 = vadd.f32 1.0, %v2721_v29  ;;  %v833_v29 = vld [vmem:[%s3886_s2 + $0x30] sm:$0xff] }
 0x111   :  { %v2723_v33 = vpop.eup %2722 }
 0x112   :  { %2726 = vrcp.f32 %v256_v32  ;;  %v265_v34 = vadd.f32 1.0, %v2723_v33  ;;  %v2725_v41 = vpop.eup %2724  ;;  %v836_v32 = vld [vmem:[%s3886_s2 + $0x48] sm:$0xff] }
 0x113   :  { %2728 = vtanh.f32 %v268_v30  ;;  %v276_v50 = vadd.f32 1.0, %v2725_v41  ;;  %v3285_v30 = vpack.c.bf16 %v833_v29, %v829_v25  ;;  %v840_v33 = vld [vmem:[%s3886_s2 + $0x68] sm:$0xff]  ;;  %v3456_v25 = vpack.c.bf16 %v871_v15, %v867_v14  ;;  %v869_v29 = vld [vmem:[%s3886_s2 + $0x150] sm:$0xff] }
 0x114   :  { %2730 = vrcp.f32 %v265_v34  ;;  %v838_v34 = vld [vmem:[%s3886_s2 + $0x58] sm:$0xff]  ;;  %v3299_v41 = vpack.c.bf16 %v840_v33, %v836_v32  ;;  %v873_v32 = vld [vmem:[%s3886_s2 + $0x170] sm:$0xff] }
 0x115   :  { %2732 = vrcp.f32 %v276_v50  ;;  %v3465_v33 = vpack.c.bf16 %v873_v32, %v869_v29 }
 0x11c   :  { %v2727_v42 = vpop.eup %2726 }
 0x11d   :  { %v2729_v46 = vpop.eup %2728 }
 0x11e   :  { %v2731_v49 = vpop.eup %2730  ;;  %v281_v55 = vmul.f32 %v2729_v46, %v2727_v42  ;;  %v842_v42 = vld [vmem:[%s3886_s2 + $0x78] sm:$0xff]  ;;  %v839_v46 = vld [vmem:[%s3886_s2 + $0x60] sm:$0xff] }
 0x11f   :  { %v280_v54 = vmul.f32 %v2731_v49, %v279_v45  ;;  %v2733_v58 = vpop.eup %2732  ;;  %v835_v45 = vld [vmem:[%s3886_s2 + $0x40] sm:$0xff]  ;;  %v3310_v49 = vpack.c.bf16 %v842_v42, %v838_v34  ;;  %v876_v34 = vld [vmem:[%s3886_s2 + $0x188] sm:$0xff] }
 0x120   :  { %v3312_v50 = vpack.c.bf16 %v839_v46, %v835_v45  ;;  %v880_v42 = vld [vmem:[%s3886_s2 + $0x1a8] sm:$0xff]  ;;  %v878_v45 = vld [vmem:[%s3886_s2 + $0x198] sm:$0xff] }
 0x121   :  { %v282_v56 = vadd.f32 %v281_v55, %v280_v54  ;;  %v837_v54 = vld [vmem:[%s3886_s2 + $0x50] sm:$0xff]  ;;  %v3479_v46 = vpack.c.bf16 %v880_v42, %v876_v34 }
 0x122   :  { %v841_v55 = vld [vmem:[%s3886_s2 + $0x70] sm:$0xff] }
 0x123   :  { %2734 = vtanh.f32 %v282_v56  ;;  %285 = vst [vmem:[#allocation3] sm:$0x3] %v282_v56  ;;  %v3321_v56 = vpack.c.bf16 %v841_v55, %v837_v54  ;;  %v882_v54 = vld [vmem:[%s3886_s2 + $0x1b8] sm:$0xff]  ;;  %v875_v55 = vld [vmem:[%s3886_s2 + $0x180] sm:$0xff] }
 0x12d   :  { %v2735_v59 = vpop.eup %2734 }
 0x12e   :  { %v284_v60 = vmul.f32 %v2735_v59, %v2733_v58  ;;  %v844_v58 = vld [vmem:[%s3886_s2 + $0x88] sm:$0xff] }
 0x12f   :  { %v848_v59 = vld [vmem:[%s3886_s2 + $0xa8] sm:$0xff] }
 0x130   :  { %286 = vst [vmem:[#allocation2] sm:$0x3] %v284_v60  ;;  %287 = vst [vmem:[%s3889_s3] sm:$0x3] %v284_v60  ;;  %v846_v60 = vld [vmem:[%s3886_s2 + $0x98] sm:$0xff] }
 0x137   :  { %v290_v62 = vld [vmem:[#allocation2] sm:$0x3] }
 0x138   :  { %420 = vmatmul.mubr.f32.vlgmr.msra.gmra.mrb[2].mxu0 %v290_v62  ;;  %491 = vmatmul.mubr.f32.vlgmr.msra.gmra.mrb[2].mxu1 %v290_v62  ;;  %v3335_v62 = vpack.c.bf16 %v848_v59, %v844_v58  ;;  %v879_v58 = vld [vmem:[%s3886_s2 + $0x1a0] sm:$0xff]  ;;  %v3490_v59 = vpack.c.bf16 %v882_v54, %v878_v45 }
 0x139   :  { %2337 = vmatpush1.bf16.msra.mxu0 %v2894_v9  ;;  %2369 = vmatpush1.bf16.msra.mxu1 %v2906_v13 }
 0x13a   :  { %2339 = vmatprep.subr.bf16.mxu0 %v2919_v17  ;;  %2371 = vmatprep.subr.bf16.mxu1 %v2921_v18 }
 0x13b   :  { %687 = vmatprep.mubr.f32.mxu0 %v2848_v3  ;;  %758 = vmatprep.mubr.f32.mxu1 %v2848_v3 }
 0x13d   :  { %2341 = vmatpush1.bf16.msra.mxu0 %v2933_v22  ;;  %2373 = vmatpush1.bf16.msra.mxu1 %v2946_v26 }
 0x13e   :  { %2343 = vmatprep.subr.bf16.mxu0 %v2948_v27  ;;  %2375 = vmatprep.subr.bf16.mxu1 %v2959_v31 }
 0x141   :  { %2345 = vmatpush1.bf16.msra.mxu0 %v2971_v35  ;;  %2377 = vmatpush1.bf16.msra.mxu1 %v2984_v39  ;;  %v2171_v35 = vld [vmem:[%s3888_s0 + $0x8] sm:$0xff] }
 0x142   :  { %2347 = vmatprep.subr.bf16.mxu0 %v2986_v40  ;;  %2379 = vmatprep.subr.bf16.mxu1 %v2998_v44 }
 0x145   :  { %2349 = vmatpush1.bf16.msra.mxu0 %v3019_v51  ;;  %2381 = vmatpush1.bf16.msra.mxu1 %v3023_v52 }
 0x146   :  { %2351 = vmatprep.subr.bf16.mxu0 %v3025_v53  ;;  %2383 = vmatprep.subr.bf16.mxu1 %v3037_v57 }
 0x149   :  { %2353 = vmatpush1.bf16.msra.mxu0 %v3055_v63  ;;  %2385 = vmatpush1.bf16.msra.mxu1 %v3059_v0 }
 0x14a   :  { %2355 = vmatprep.subr.bf16.mxu0 %v3061_v1  ;;  %2387 = vmatprep.subr.bf16.mxu1 %v3073_v7 }
 0x14d   :  { %2357 = vmatpush1.bf16.msra.mxu0 %v3091_v16  ;;  %2389 = vmatpush1.bf16.msra.mxu1 %v3098_v20 }
 0x14e   :  { %2359 = vmatprep.subr.bf16.mxu0 %v3100_v21  ;;  %2391 = vmatprep.subr.bf16.mxu1 %v3112_v28 }
 0x151   :  { %2361 = vmatpush1.bf16.msra.mxu0 %v3130_v36  ;;  %2393 = vmatpush1.bf16.msra.mxu1 %v3134_v37 }
 0x152   :  { %2363 = vmatprep.subr.bf16.mxu0 %v3136_v38  ;;  %2395 = vmatprep.subr.bf16.mxu1 %v3145_v43  ;;  %v546_v38 = vld [vmem:[#allocation3] sm:$0x3] }
 0x155   :  { %2365 = vmatpush1.bf16.msra.mxu0 %v3154_v47  ;;  %2397 = vmatpush1.bf16.msra.mxu1 %v3158_v48 }
 0x156   :  { %2399 = vmatprep.subr.bf16.mxu0 %v3263_v12  ;;  %2431 = vmatprep.subr.bf16.mxu1 %v3274_v23 }
 0x20b   :  { %v421_v9 = vpop.f32.mrb[2].mxu0  ;;  %v492_v13 = vpop.f32.mrb[2].mxu1 }
 0x20c   :  { %v423_v17 = vpop.f32.mrb[3].mxu0  ;;  %v494_v18 = vpop.f32.mrb[3].mxu1 }
 0x20d   :  { %v501_v22 = vcombine.low %v421_v9, %v423_v17  ;;  %v502_v26 = vcombine.low %v492_v13, %v494_v18  ;;  %v850_v9 = vld [vmem:[%s3886_s2 + $0xb8] sm:$0xff]  ;;  %v843_v13 = vld [vmem:[%s3886_s2 + $0x80] sm:$0xff] }
 0x20e   :  { %v847_v17 = vld [vmem:[%s3886_s2 + $0xa0] sm:$0xff]  ;;  %v3346_v18 = vpack.c.bf16 %v850_v9, %v846_v60  ;;  %v3492_v60 = vpack.c.bf16 %v879_v58, %v875_v55  ;;  %v877_v9 = vld [vmem:[%s3886_s2 + $0x190] sm:$0xff] }
 0x20f   :  { %v509_v27 = vrot.slane %v501_v22, %v3202_v61  ;;  %v516_v31 = vrot.slane %v502_v26, %v3202_v61  ;;  %v3348_v22 = vpack.c.bf16 %v847_v17, %v843_v13  ;;  %v845_v26 = vld [vmem:[%s3886_s2 + $0x90] sm:$0xff]  ;;  %v884_v17 = vld [vmem:[%s3886_s2 + $0x1c8] sm:$0xff] }
 0x210   :  { %v881_v13 = vld [vmem:[%s3886_s2 + $0x1b0] sm:$0xff] }
 0x211   :  { %v517_v39 = vcombine.low %v509_v27, %v516_v31  ;;  %v849_v27 = vld [vmem:[%s3886_s2 + $0xb0] sm:$0xff] }
 0x212   :  { %v3357_v31 = vpack.c.bf16 %v849_v27, %v845_v26  ;;  %v3504_v26 = vpack.c.bf16 %v881_v13, %v877_v9  ;;  %v888_v27 = vld [vmem:[%s3886_s2 + $0x1e8] sm:$0xff] }
 0x213   :  { %v519_v40 = vadd.f32 %v2171_v35, %v517_v39  ;;  %v852_v35 = vld [vmem:[%s3886_s2 + $0xc8] sm:$0xff] }
 0x214   :  { %v856_v39 = vld [vmem:[%s3886_s2 + $0xe8] sm:$0xff] }
 0x215   :  { %v2172_v44 = vmul.f32 -1.442695, %v519_v40  ;;  %v527_v51 = vrot.slane %v519_v40, 2  ;;  %v538_v53 = vrot.slane %v519_v40, 6  ;;  %v535_v0 = vrot.slane %v519_v40, 4  ;;  %v854_v40 = vld [vmem:[%s3886_s2 + $0xd8] sm:$0xff] }
 0x217   :  { %2736 = vpow2.f32 %v2172_v44  ;;  %v2173_v52 = vmul.f32 -1.442695, %v527_v51  ;;  %v2174_v57 = vmul.f32 -1.442695, %v538_v53  ;;  %v3371_v44 = vpack.c.bf16 %v856_v39, %v852_v35  ;;  %v858_v51 = vld [vmem:[%s3886_s2 + $0xf8] sm:$0xff]  ;;  %v855_v53 = vld [vmem:[%s3886_s2 + $0xe0] sm:$0xff] }
 0x218   :  { %v886_v35 = vld [vmem:[%s3886_s2 + $0x1d8] sm:$0xff] }
 0x219   :  { %2738 = vpow2.f32 %v2173_v52  ;;  %v851_v52 = vld [vmem:[%s3886_s2 + $0xc0] sm:$0xff]  ;;  %v890_v39 = vld [vmem:[%s3886_s2 + $0x1f8] sm:$0xff] }
 0x21a   :  { %2740 = vpow2.f32 %v2174_v57  ;;  %v3382_v57 = vpack.c.bf16 %v858_v51, %v854_v40  ;;  %v3517_v40 = vpack.c.bf16 %v888_v27, %v884_v17  ;;  %v3519_v51 = vpack.c.bf16 %v890_v39, %v886_v35 }
 0x221   :  { %v2737_v63 = vpop.eup %2736 }
 0x222   :  { %v523_v1 = vadd.f32 1.0, %v2737_v63  ;;  %v3384_v63 = vpack.c.bf16 %v855_v53, %v851_v52  ;;  %v883_v52 = vld [vmem:[%s3886_s2 + $0x1c0] sm:$0xff] }
 0x223   :  { %v2739_v7 = vpop.eup %2738  ;;  %v887_v53 = vld [vmem:[%s3886_s2 + $0x1e0] sm:$0xff] }
 0x224   :  { %2742 = vrcp.f32 %v523_v1  ;;  %v532_v16 = vadd.f32 1.0, %v2739_v7  ;;  %v2741_v20 = vpop.eup %2740  ;;  %v857_v1 = vld [vmem:[%s3886_s2 + $0xf0] sm:$0xff] }
 0x225   :  { %2744 = vtanh.f32 %v535_v0  ;;  %v543_v37 = vadd.f32 1.0, %v2741_v20  ;;  %v853_v0 = vld [vmem:[%s3886_s2 + $0xd0] sm:$0xff]  ;;  %v864_v20 = vld [vmem:[%s3886_s2 + $0x128] sm:$0xff] }
 0x226   :  { %2746 = vrcp.f32 %v532_v16  ;;  %v3393_v7 = vpack.c.bf16 %v857_v1, %v853_v0  ;;  %v860_v16 = vld [vmem:[%s3886_s2 + $0x108] sm:$0xff]  ;;  %v885_v0 = vld [vmem:[%s3886_s2 + $0x1d0] sm:$0xff]  ;;  %v3531_v1 = vpack.c.bf16 %v887_v53, %v883_v52 }
 0x227   :  { %2748 = vrcp.f32 %v543_v37  ;;  %v859_v37 = vld [vmem:[%s3886_s2 + $0x100] sm:$0xff] }
 0x22e   :  { %v2743_v21 = vpop.eup %2742 }
 0x22f   :  { %v2745_v28 = vpop.eup %2744 }
 0x230   :  { %v2747_v36 = vpop.eup %2746  ;;  %v548_v47 = vmul.f32 %v2745_v28, %v2743_v21  ;;  %v862_v21 = vld [vmem:[%s3886_s2 + $0x118] sm:$0xff]  ;;  %v3407_v28 = vpack.c.bf16 %v864_v20, %v860_v16  ;;  %v889_v16 = vld [vmem:[%s3886_s2 + $0x1f0] sm:$0xff] }
 0x231   :  { %v547_v43 = vmul.f32 %v2747_v36, %v546_v38  ;;  %v2749_v2 = vpop.eup %2748  ;;  %v866_v36 = vld [vmem:[%s3886_s2 + $0x138] sm:$0xff]  ;;  %v863_v38 = vld [vmem:[%s3886_s2 + $0x120] sm:$0xff]  ;;  %v3538_v20 = vpack.c.bf16 %v889_v16, %v885_v0 }
 0x233   :  { %v549_v48 = vadd.f32 %v548_v47, %v547_v43  ;;  %v3418_v43 = vpack.c.bf16 %v866_v36, %v862_v21  ;;  %v3420_v47 = vpack.c.bf16 %v863_v38, %v859_v37 }
 0x235   :  { %2750 = vtanh.f32 %v549_v48  ;;  %552 = vst [vmem:[#allocation3] sm:$0x3] %v549_v48  ;;  %v861_v48 = vld [vmem:[%s3886_s2 + $0x110] sm:$0xff] }
 0x23c   :  { %v814_v52 = vld [vmem:[#allocation3] sm:$0x3] }
 0x23f   :  { %v2751_v5 = vpop.eup %2750 }
 0x240   :  { %v551_v6 = vmul.f32 %v2751_v5, %v2749_v2  ;;  %v865_v2 = vld [vmem:[%s3886_s2 + $0x130] sm:$0xff] }
 0x241   :  { %v3429_v5 = vpack.c.bf16 %v865_v2, %v861_v48 }
 0x242   :  { %553 = vst [vmem:[#allocation2] sm:$0x3] %v551_v6  ;;  %2175 = vst [vmem:[%s3889_s3 + $0x2] sm:$0x3] %v551_v6  ;;  %v868_v6 = vld [vmem:[%s3886_s2 + $0x148] sm:$0xff] }
 0x249   :  { %v558_v4 = vld [vmem:[#allocation2] sm:$0x3] }
 0x24a   :  { %688 = vmatmul.mubr.f32.vlgmr.msra.gmra.mrb[4].mxu0 %v558_v4  ;;  %759 = vmatmul.mubr.f32.vlgmr.msra.gmra.mrb[4].mxu1 %v558_v4  ;;  %v872_v4 = vld [vmem:[%s3886_s2 + $0x168] sm:$0xff] }
 0x24b   :  { %955 = vmatprep.mubr.f32.mxu0 %v2848_v3  ;;  %1026 = vmatprep.mubr.f32.mxu1 %v2848_v3  ;;  %v3443_v10 = vpack.c.bf16 %v872_v4, %v868_v6 }
 0x24c   :  { %2401 = vmatpush1.bf16.msra.mxu0 %v3276_v24  ;;  %2433 = vmatpush1.bf16.msra.mxu1 %v3285_v30 }
 0x24d   :  { %2403 = vmatprep.subr.bf16.mxu0 %v3299_v41  ;;  %2435 = vmatprep.subr.bf16.mxu1 %v3310_v49 }
 0x250   :  { %2405 = vmatpush1.bf16.msra.mxu0 %v3312_v50  ;;  %2437 = vmatpush1.bf16.msra.mxu1 %v3321_v56 }
 0x251   :  { %2407 = vmatprep.subr.bf16.mxu0 %v3335_v62  ;;  %2439 = vmatprep.subr.bf16.mxu1 %v3346_v18 }
 0x254   :  { %2409 = vmatpush1.bf16.msra.mxu0 %v3348_v22  ;;  %2441 = vmatpush1.bf16.msra.mxu1 %v3357_v31 }
 0x255   :  { %2411 = vmatprep.subr.bf16.mxu0 %v3371_v44  ;;  %2443 = vmatprep.subr.bf16.mxu1 %v3382_v57 }
 0x258   :  { %2413 = vmatpush1.bf16.msra.mxu0 %v3384_v63  ;;  %2445 = vmatpush1.bf16.msra.mxu1 %v3393_v7 }
 0x259   :  { %2415 = vmatprep.subr.bf16.mxu0 %v3407_v28  ;;  %2447 = vmatprep.subr.bf16.mxu1 %v3418_v43 }
 0x25c   :  { %2417 = vmatpush1.bf16.msra.mxu0 %v3420_v47  ;;  %2449 = vmatpush1.bf16.msra.mxu1 %v3429_v5 }
 0x25d   :  { %2419 = vmatprep.subr.bf16.mxu0 %v3443_v10  ;;  %2451 = vmatprep.subr.bf16.mxu1 %v3454_v19 }
 0x260   :  { %2421 = vmatpush1.bf16.msra.mxu0 %v3456_v25  ;;  %2453 = vmatpush1.bf16.msra.mxu1 %v3465_v33 }
 0x261   :  { %2423 = vmatprep.subr.bf16.mxu0 %v3479_v46  ;;  %2455 = vmatprep.subr.bf16.mxu1 %v3490_v59 }
 0x264   :  { %2425 = vmatpush1.bf16.msra.mxu0 %v3492_v60  ;;  %2457 = vmatpush1.bf16.msra.mxu1 %v3504_v26 }
 0x265   :  { %2427 = vmatprep.subr.bf16.mxu0 %v3517_v40  ;;  %2459 = vmatprep.subr.bf16.mxu1 %v3519_v51 }
 0x268   :  { %2429 = vmatpush1.bf16.msra.mxu0 %v3531_v1  ;;  %2461 = vmatpush1.bf16.msra.mxu1 %v3538_v20 }
 0x269   :  { %2463 = vmatprep.subr.bf16.mxu0 %v3263_v12  ;;  %2495 = vmatprep.subr.bf16.mxu1 %v3274_v23 }
 0x31d   :  { %v689_v21 = vpop.f32.mrb[4].mxu0  ;;  %v760_v36 = vpop.f32.mrb[4].mxu1 }
 0x31e   :  { %v691_v37 = vpop.f32.mrb[5].mxu0  ;;  %v762_v38 = vpop.f32.mrb[5].mxu1 }
 0x31f   :  { %v769_v48 = vcombine.low %v689_v21, %v691_v37  ;;  %v770_v2 = vcombine.low %v760_v36, %v762_v38 }
 0x321   :  { %v777_v6 = vrot.slane %v769_v48, %v3202_v61  ;;  %v784_v4 = vrot.slane %v770_v2, %v3202_v61 }
 0x323   :  { %v785_v11 = vcombine.low %v777_v6, %v784_v4 }
 0x325   :  { %v787_v14 = vadd.f32 %v2176_v8, %v785_v11 }
 0x327   :  { %v2177_v15 = vmul.f32 -1.442695, %v787_v14  ;;  %v795_v29 = vrot.slane %v787_v14, 2  ;;  %v806_v34 = vrot.slane %v787_v14, 6  ;;  %v803_v54 = vrot.slane %v787_v14, 4 }
 0x329   :  { %2752 = vpow2.f32 %v2177_v15  ;;  %v2178_v32 = vmul.f32 -1.442695, %v795_v29  ;;  %v2179_v42 = vmul.f32 -1.442695, %v806_v34  ;;  %v2181_v29 = vld [vmem:[%s3888_s0 + $0x18] sm:$0xff] }
 0x32b   :  { %2754 = vpow2.f32 %v2178_v32 }
 0x32c   :  { %2756 = vpow2.f32 %v2179_v42 }
 0x333   :  { %v2753_v45 = vpop.eup %2752 }
 0x334   :  { %v791_v55 = vadd.f32 1.0, %v2753_v45 }
 0x335   :  { %v2755_v58 = vpop.eup %2754 }
 0x336   :  { %2758 = vrcp.f32 %v791_v55  ;;  %v800_v9 = vadd.f32 1.0, %v2755_v58  ;;  %v2757_v13 = vpop.eup %2756 }
 0x337   :  { %2760 = vtanh.f32 %v803_v54  ;;  %v811_v39 = vadd.f32 1.0, %v2757_v13 }
 0x338   :  { %2762 = vrcp.f32 %v800_v9 }
 0x339   :  { %2764 = vrcp.f32 %v811_v39 }
 0x340   :  { %v2759_v17 = vpop.eup %2758 }
 0x341   :  { %v2761_v27 = vpop.eup %2760 }
 0x342   :  { %v2763_v35 = vpop.eup %2762  ;;  %v816_v0 = vmul.f32 %v2761_v27, %v2759_v17 }
 0x343   :  { %v815_v53 = vmul.f32 %v2763_v35, %v814_v52  ;;  %v2765_v21 = vpop.eup %2764 }
 0x345   :  { %v817_v16 = vadd.f32 %v816_v0, %v815_v53 }
 0x347   :  { %2766 = vtanh.f32 %v817_v16  ;;  %820 = vst [vmem:[#allocation3] sm:$0x3] %v817_v16 }
 0x351   :  { %v2767_v36 = vpop.eup %2766 }
 0x352   :  { %v819_v37 = vmul.f32 %v2767_v36, %v2765_v21  ;;  %v1082_v21 = vld [vmem:[#allocation3] sm:$0x3] }
 0x354   :  { %821 = vst [vmem:[#allocation2] sm:$0x3] %v819_v37  ;;  %2180 = vst [vmem:[%s3889_s3 + $0x4] sm:$0x3] %v819_v37 }
 0x35b   :  { %v826_v38 = vld [vmem:[#allocation2] sm:$0x3] }
 0x35c   :  { %956 = vmatmul.mubr.f32.vlgmr.msra.gmra.mrb[6].mxu0 %v826_v38  ;;  %1027 = vmatmul.mubr.f32.vlgmr.msra.gmra.mrb[6].mxu1 %v826_v38 }
 0x35d   :  { %2465 = vmatpush1.bf16.msra.mxu0 %v3276_v24  ;;  %2497 = vmatpush1.bf16.msra.mxu1 %v3285_v30 }
 0x35e   :  { %2467 = vmatprep.subr.bf16.mxu0 %v3299_v41  ;;  %2499 = vmatprep.subr.bf16.mxu1 %v3310_v49 }
 0x35f   :  { %1223 = vmatprep.mubr.f32.mxu0 %v2848_v3  ;;  %1294 = vmatprep.mubr.f32.mxu1 %v2848_v3 }
 0x361   :  { %2469 = vmatpush1.bf16.msra.mxu0 %v3312_v50  ;;  %2501 = vmatpush1.bf16.msra.mxu1 %v3321_v56 }
 0x362   :  { %2471 = vmatprep.subr.bf16.mxu0 %v3335_v62  ;;  %2503 = vmatprep.subr.bf16.mxu1 %v3346_v18 }
 0x365   :  { %2473 = vmatpush1.bf16.msra.mxu0 %v3348_v22  ;;  %2505 = vmatpush1.bf16.msra.mxu1 %v3357_v31 }
 0x366   :  { %2475 = vmatprep.subr.bf16.mxu0 %v3371_v44  ;;  %2507 = vmatprep.subr.bf16.mxu1 %v3382_v57 }
 0x369   :  { %2477 = vmatpush1.bf16.msra.mxu0 %v3384_v63  ;;  %2509 = vmatpush1.bf16.msra.mxu1 %v3393_v7 }
 0x36a   :  { %2479 = vmatprep.subr.bf16.mxu0 %v3407_v28  ;;  %2511 = vmatprep.subr.bf16.mxu1 %v3418_v43 }
 0x36d   :  { %2481 = vmatpush1.bf16.msra.mxu0 %v3420_v47  ;;  %2513 = vmatpush1.bf16.msra.mxu1 %v3429_v5 }
 0x36e   :  { %2483 = vmatprep.subr.bf16.mxu0 %v3443_v10  ;;  %2515 = vmatprep.subr.bf16.mxu1 %v3454_v19 }
 0x371   :  { %2485 = vmatpush1.bf16.msra.mxu0 %v3456_v25  ;;  %2517 = vmatpush1.bf16.msra.mxu1 %v3465_v33 }
 0x372   :  { %2487 = vmatprep.subr.bf16.mxu0 %v3479_v46  ;;  %2519 = vmatprep.subr.bf16.mxu1 %v3490_v59 }
 0x375   :  { %2489 = vmatpush1.bf16.msra.mxu0 %v3492_v60  ;;  %2521 = vmatpush1.bf16.msra.mxu1 %v3504_v26 }
 0x376   :  { %2491 = vmatprep.subr.bf16.mxu0 %v3517_v40  ;;  %2523 = vmatprep.subr.bf16.mxu1 %v3519_v51 }
 0x379   :  { %2493 = vmatpush1.bf16.msra.mxu0 %v3531_v1  ;;  %2525 = vmatpush1.bf16.msra.mxu1 %v3538_v20 }
 0x37a   :  { %2527 = vmatprep.subr.bf16.mxu0 %v3263_v12  ;;  %2559 = vmatprep.subr.bf16.mxu1 %v3274_v23 }
 0x42f   :  { %v957_v48 = vpop.f32.mrb[6].mxu0  ;;  %v1028_v2 = vpop.f32.mrb[6].mxu1 }
 0x430   :  { %v959_v6 = vpop.f32.mrb[7].mxu0  ;;  %v1030_v4 = vpop.f32.mrb[7].mxu1 }
 0x431   :  { %v1037_v8 = vcombine.low %v957_v48, %v959_v6  ;;  %v1038_v11 = vcombine.low %v1028_v2, %v1030_v4 }
 0x433   :  { %v1045_v14 = vrot.slane %v1037_v8, %v3202_v61  ;;  %v1052_v15 = vrot.slane %v1038_v11, %v3202_v61 }
 0x435   :  { %v1053_v32 = vcombine.low %v1045_v14, %v1052_v15 }
 0x437   :  { %v1055_v34 = vadd.f32 %v2181_v29, %v1053_v32 }
 0x439   :  { %v2182_v42 = vmul.f32 -1.442695, %v1055_v34  ;;  %v1063_v45 = vrot.slane %v1055_v34, 2  ;;  %v1074_v55 = vrot.slane %v1055_v34, 6  ;;  %v1071_v13 = vrot.slane %v1055_v34, 4 }
 0x43b   :  { %2768 = vpow2.f32 %v2182_v42  ;;  %v2183_v54 = vmul.f32 -1.442695, %v1063_v45  ;;  %v2184_v58 = vmul.f32 -1.442695, %v1074_v55  ;;  %v2186_v45 = vld [vmem:[%s3888_s0 + $0x20] sm:$0xff] }
 0x43d   :  { %2770 = vpow2.f32 %v2183_v54 }
 0x43e   :  { %2772 = vpow2.f32 %v2184_v58 }
 0x445   :  { %v2769_v9 = vpop.eup %2768 }
 0x446   :  { %v1059_v17 = vadd.f32 1.0, %v2769_v9 }
 0x447   :  { %v2771_v27 = vpop.eup %2770 }
 0x448   :  { %2774 = vrcp.f32 %v1059_v17  ;;  %v1068_v35 = vadd.f32 1.0, %v2771_v27  ;;  %v2773_v39 = vpop.eup %2772 }
 0x449   :  { %2776 = vtanh.f32 %v1071_v13  ;;  %v1079_v16 = vadd.f32 1.0, %v2773_v39 }
 0x44a   :  { %2778 = vrcp.f32 %v1068_v35 }
 0x44b   :  { %2780 = vrcp.f32 %v1079_v16 }
 0x452   :  { %v2775_v52 = vpop.eup %2774 }
 0x453   :  { %v2777_v53 = vpop.eup %2776 }
 0x454   :  { %v2779_v0 = vpop.eup %2778  ;;  %v1084_v37 = vmul.f32 %v2777_v53, %v2775_v52 }
 0x455   :  { %v1083_v36 = vmul.f32 %v2779_v0, %v1082_v21  ;;  %v2781_v48 = vpop.eup %2780 }
 0x457   :  { %v1085_v38 = vadd.f32 %v1084_v37, %v1083_v36 }
 0x459   :  { %2782 = vtanh.f32 %v1085_v38  ;;  %1088 = vst [vmem:[#allocation3] sm:$0x3] %v1085_v38 }
 0x460   :  { %v1350_v37 = vld [vmem:[#allocation3] sm:$0x3] }
 0x463   :  { %v2783_v2 = vpop.eup %2782 }
 0x464   :  { %v1087_v6 = vmul.f32 %v2783_v2, %v2781_v48 }
 0x466   :  { %2185 = vst [vmem:[%s3889_s3 + $0x6] sm:$0x3] %v1087_v6  ;;  %1089 = vst [vmem:[#allocation2] sm:$0x3] %v1087_v6 }
 0x46d   :  { %v1094_v4 = vld [vmem:[#allocation2] sm:$0x3] }
 0x46e   :  { %1224 = vmatmul.mubr.f32.vlgmr.msra.gmra.mrb[8].mxu0 %v1094_v4  ;;  %1295 = vmatmul.mubr.f32.vlgmr.msra.gmra.mrb[8].mxu1 %v1094_v4 }
 0x46f   :  { %2529 = vmatpush1.bf16.msra.mxu0 %v3276_v24  ;;  %2561 = vmatpush1.bf16.msra.mxu1 %v3285_v30 }
 0x470   :  { %2531 = vmatprep.subr.bf16.mxu0 %v3299_v41  ;;  %2563 = vmatprep.subr.bf16.mxu1 %v3310_v49 }
 0x471   :  { %1491 = vmatprep.mubr.f32.mxu0 %v2848_v3  ;;  %1562 = vmatprep.mubr.f32.mxu1 %v2848_v3 }
 0x473   :  { %2533 = vmatpush1.bf16.msra.mxu0 %v3312_v50  ;;  %2565 = vmatpush1.bf16.msra.mxu1 %v3321_v56 }
 0x474   :  { %2535 = vmatprep.subr.bf16.mxu0 %v3335_v62  ;;  %2567 = vmatprep.subr.bf16.mxu1 %v3346_v18 }
 0x477   :  { %2537 = vmatpush1.bf16.msra.mxu0 %v3348_v22  ;;  %2569 = vmatpush1.bf16.msra.mxu1 %v3357_v31 }
 0x478   :  { %2539 = vmatprep.subr.bf16.mxu0 %v3371_v44  ;;  %2571 = vmatprep.subr.bf16.mxu1 %v3382_v57 }
 0x47b   :  { %2541 = vmatpush1.bf16.msra.mxu0 %v3384_v63  ;;  %2573 = vmatpush1.bf16.msra.mxu1 %v3393_v7 }
 0x47c   :  { %2543 = vmatprep.subr.bf16.mxu0 %v3407_v28  ;;  %2575 = vmatprep.subr.bf16.mxu1 %v3418_v43 }
 0x47f   :  { %2545 = vmatpush1.bf16.msra.mxu0 %v3420_v47  ;;  %2577 = vmatpush1.bf16.msra.mxu1 %v3429_v5 }
 0x480   :  { %2547 = vmatprep.subr.bf16.mxu0 %v3443_v10  ;;  %2579 = vmatprep.subr.bf16.mxu1 %v3454_v19 }
 0x483   :  { %2549 = vmatpush1.bf16.msra.mxu0 %v3456_v25  ;;  %2581 = vmatpush1.bf16.msra.mxu1 %v3465_v33 }
 0x484   :  { %2551 = vmatprep.subr.bf16.mxu0 %v3479_v46  ;;  %2583 = vmatprep.subr.bf16.mxu1 %v3490_v59 }
 0x487   :  { %2553 = vmatpush1.bf16.msra.mxu0 %v3492_v60  ;;  %2585 = vmatpush1.bf16.msra.mxu1 %v3504_v26 }
 0x488   :  { %2555 = vmatprep.subr.bf16.mxu0 %v3517_v40  ;;  %2587 = vmatprep.subr.bf16.mxu1 %v3519_v51 }
 0x48b   :  { %2557 = vmatpush1.bf16.msra.mxu0 %v3531_v1  ;;  %2589 = vmatpush1.bf16.msra.mxu1 %v3538_v20 }
 0x48c   :  { %2591 = vmatprep.subr.bf16.mxu0 %v3263_v12  ;;  %2623 = vmatprep.subr.bf16.mxu1 %v3274_v23 }
 0x541   :  { %v1225_v8 = vpop.f32.mrb[8].mxu0  ;;  %v1296_v11 = vpop.f32.mrb[8].mxu1 }
 0x542   :  { %v1227_v14 = vpop.f32.mrb[9].mxu0  ;;  %v1298_v15 = vpop.f32.mrb[9].mxu1 }
 0x543   :  { %v1305_v29 = vcombine.low %v1225_v8, %v1227_v14  ;;  %v1306_v32 = vcombine.low %v1296_v11, %v1298_v15 }
 0x545   :  { %v1313_v34 = vrot.slane %v1305_v29, %v3202_v61  ;;  %v1320_v42 = vrot.slane %v1306_v32, %v3202_v61 }
 0x547   :  { %v1321_v54 = vcombine.low %v1313_v34, %v1320_v42  ;;  %v1900_v34 = vld [vmem:[%s3886_s2 + $0x8] sm:$0xff] }
 0x548   :  { %v1904_v42 = vld [vmem:[%s3886_s2 + $0x28] sm:$0xff] }
 0x549   :  { %v1323_v55 = vadd.f32 %v2186_v45, %v1321_v54  ;;  %v1902_v45 = vld [vmem:[%s3886_s2 + $0x18] sm:$0xff]  ;;  %v2654_v54 = vpack.c.bf16 %v1904_v42, %v1900_v34 }
 0x54a   :  { %v1946_v42 = vld [vmem:[%s3886_s2 + $0x178] sm:$0xff] }
 0x54b   :  { %v2187_v58 = vmul.f32 -1.442695, %v1323_v55  ;;  %v1331_v12 = vrot.slane %v1323_v55, 2  ;;  %v1342_v9 = vrot.slane %v1323_v55, 6  ;;  %v1339_v27 = vrot.slane %v1323_v55, 4  ;;  %v1906_v55 = vld [vmem:[%s3886_s2 + $0x38] sm:$0xff] }
 0x54d   :  { %2784 = vpow2.f32 %v2187_v58  ;;  %v2188_v23 = vmul.f32 -1.442695, %v1331_v12  ;;  %v2189_v13 = vmul.f32 -1.442695, %v1342_v9  ;;  %v1903_v58 = vld [vmem:[%s3886_s2 + $0x20] sm:$0xff]  ;;  %v2686_v12 = vpack.c.bf16 %v1906_v55, %v1902_v45  ;;  %v1901_v9 = vld [vmem:[%s3886_s2 + $0x10] sm:$0xff] }
 0x54e   :  { %v1939_v45 = vld [vmem:[%s3886_s2 + $0x140] sm:$0xff] }
 0x54f   :  { %2786 = vpow2.f32 %v2188_v23 }
 0x550   :  { %2788 = vpow2.f32 %v2189_v13  ;;  %v1905_v13 = vld [vmem:[%s3886_s2 + $0x30] sm:$0xff] }
 0x557   :  { %v2785_v17 = vpop.eup %2784 }
 0x558   :  { %v1327_v35 = vadd.f32 1.0, %v2785_v17  ;;  %v2688_v17 = vpack.c.bf16 %v1905_v13, %v1901_v9  ;;  %v1948_v9 = vld [vmem:[%s3886_s2 + $0x188] sm:$0xff] }
 0x559   :  { %v2787_v39 = vpop.eup %2786  ;;  %v1952_v13 = vld [vmem:[%s3886_s2 + $0x1a8] sm:$0xff] }
 0x55a   :  { %2790 = vrcp.f32 %v1327_v35  ;;  %v1336_v52 = vadd.f32 1.0, %v2787_v39  ;;  %v2789_v53 = vpop.eup %2788  ;;  %v1912_v35 = vld [vmem:[%s3886_s2 + $0x68] sm:$0xff]  ;;  %v1910_v39 = vld [vmem:[%s3886_s2 + $0x58] sm:$0xff] }
 0x55b   :  { %2792 = vtanh.f32 %v1339_v27  ;;  %v1347_v36 = vadd.f32 1.0, %v2789_v53  ;;  %v1908_v27 = vld [vmem:[%s3886_s2 + $0x48] sm:$0xff]  ;;  %v1914_v53 = vld [vmem:[%s3886_s2 + $0x78] sm:$0xff] }
 0x55c   :  { %2794 = vrcp.f32 %v1336_v52  ;;  %v2658_v52 = vpack.c.bf16 %v1912_v35, %v1908_v27  ;;  %v2678_v27 = vpack.c.bf16 %v1952_v13, %v1948_v9  ;;  %v1954_v35 = vld [vmem:[%s3886_s2 + $0x1b8] sm:$0xff] }
 0x55d   :  { %2796 = vrcp.f32 %v1347_v36 }
 0x564   :  { %v2791_v0 = vpop.eup %2790 }
 0x565   :  { %v2793_v16 = vpop.eup %2792 }
 0x566   :  { %v2795_v21 = vpop.eup %2794  ;;  %v1352_v48 = vmul.f32 %v2793_v16, %v2791_v0  ;;  %v1907_v0 = vld [vmem:[%s3886_s2 + $0x40] sm:$0xff] }
 0x567   :  { %v1351_v38 = vmul.f32 %v2795_v21, %v1350_v37  ;;  %v2797_v6 = vpop.eup %2796  ;;  %v1911_v16 = vld [vmem:[%s3886_s2 + $0x60] sm:$0xff]  ;;  %v2690_v21 = vpack.c.bf16 %v1914_v53, %v1910_v39  ;;  %v1909_v37 = vld [vmem:[%s3886_s2 + $0x50] sm:$0xff] }
 0x568   :  { %v2660_v36 = vpack.c.bf16 %v1911_v16, %v1907_v0  ;;  %v1947_v39 = vld [vmem:[%s3886_s2 + $0x180] sm:$0xff]  ;;  %v1949_v16 = vld [vmem:[%s3886_s2 + $0x190] sm:$0xff] }
 0x569   :  { %v1353_v2 = vadd.f32 %v1352_v48, %v1351_v38  ;;  %v1913_v38 = vld [vmem:[%s3886_s2 + $0x70] sm:$0xff] }
 0x56a   :  { %v2692_v48 = vpack.c.bf16 %v1913_v38, %v1909_v37  ;;  %v1960_v38 = vld [vmem:[%s3886_s2 + $0x1e8] sm:$0xff] }
 0x56b   :  { %2798 = vtanh.f32 %v1353_v2  ;;  %1356 = vst [vmem:[#allocation3] sm:$0x3] %v1353_v2  ;;  %v1916_v2 = vld [vmem:[%s3886_s2 + $0x88] sm:$0xff] }
 0x575   :  { %v2799_v4 = vpop.eup %2798 }
 0x576   :  { %v1355_v8 = vmul.f32 %v2799_v4, %v2797_v6  ;;  %v1920_v6 = vld [vmem:[%s3886_s2 + $0xa8] sm:$0xff]  ;;  %v1918_v4 = vld [vmem:[%s3886_s2 + $0x98] sm:$0xff] }
 0x578   :  { %2190 = vst [vmem:[%s3889_s3 + $0x8] sm:$0x3] %v1355_v8  ;;  %1357 = vst [vmem:[#allocation2] sm:$0x3] %v1355_v8  ;;  %v2662_v8 = vpack.c.bf16 %v1920_v6, %v1916_v2  ;;  %v1962_v2 = vld [vmem:[%s3886_s2 + $0x1f8] sm:$0xff] }
 0x57f   :  { %v1362_v11 = vld [vmem:[#allocation2] sm:$0x3] }
 0x580   :  { %1492 = vmatmul.mubr.f32.vlgmr.msra.gmra.mrb[10].mxu0 %v1362_v11  ;;  %1563 = vmatmul.mubr.f32.vlgmr.msra.gmra.mrb[10].mxu1 %v1362_v11  ;;  %v1922_v11 = vld [vmem:[%s3886_s2 + $0xb8] sm:$0xff] }
 0x581   :  { %2593 = vmatpush1.bf16.msra.mxu0 %v3276_v24  ;;  %2625 = vmatpush1.bf16.msra.mxu1 %v3285_v30 }
 0x582   :  { %2595 = vmatprep.subr.bf16.mxu0 %v3299_v41  ;;  %2627 = vmatprep.subr.bf16.mxu1 %v3310_v49 }
 0x583   :  { %1759 = vmatprep.mubr.f32.mxu0 %v2848_v3  ;;  %1830 = vmatprep.mubr.f32.mxu1 %v2848_v3 }
 0x585   :  { %2597 = vmatpush1.bf16.msra.mxu0 %v3312_v50  ;;  %2629 = vmatpush1.bf16.msra.mxu1 %v3321_v56 }
 0x586   :  { %2599 = vmatprep.subr.bf16.mxu0 %v3335_v62  ;;  %2631 = vmatprep.subr.bf16.mxu1 %v3346_v18 }
 0x589   :  { %2601 = vmatpush1.bf16.msra.mxu0 %v3348_v22  ;;  %2633 = vmatpush1.bf16.msra.mxu1 %v3357_v31  ;;  %v2191_v22 = vld [vmem:[%s3888_s0 + $0x28] sm:$0xff] }
 0x58a   :  { %2603 = vmatprep.subr.bf16.mxu0 %v3371_v44  ;;  %2635 = vmatprep.subr.bf16.mxu1 %v3382_v57 }
 0x58d   :  { %2605 = vmatpush1.bf16.msra.mxu0 %v3384_v63  ;;  %2637 = vmatpush1.bf16.msra.mxu1 %v3393_v7 }
 0x58e   :  { %2607 = vmatprep.subr.bf16.mxu0 %v3407_v28  ;;  %2639 = vmatprep.subr.bf16.mxu1 %v3418_v43 }
 0x591   :  { %2609 = vmatpush1.bf16.msra.mxu0 %v3420_v47  ;;  %2641 = vmatpush1.bf16.msra.mxu1 %v3429_v5 }
 0x592   :  { %2611 = vmatprep.subr.bf16.mxu0 %v3443_v10  ;;  %2643 = vmatprep.subr.bf16.mxu1 %v3454_v19 }
 0x595   :  { %2613 = vmatpush1.bf16.msra.mxu0 %v3456_v25  ;;  %2645 = vmatpush1.bf16.msra.mxu1 %v3465_v33 }
 0x596   :  { %2615 = vmatprep.subr.bf16.mxu0 %v3479_v46  ;;  %2647 = vmatprep.subr.bf16.mxu1 %v3490_v59 }
 0x599   :  { %2617 = vmatpush1.bf16.msra.mxu0 %v3492_v60  ;;  %2649 = vmatpush1.bf16.msra.mxu1 %v3504_v26 }
 0x59a   :  { %2619 = vmatprep.subr.bf16.mxu0 %v3517_v40  ;;  %2651 = vmatprep.subr.bf16.mxu1 %v3519_v51  ;;  %v1618_v40 = vld [vmem:[#allocation3] sm:$0x3] }
 0x59d   :  { %2621 = vmatpush1.bf16.msra.mxu0 %v3531_v1  ;;  %2653 = vmatpush1.bf16.msra.mxu1 %v3538_v20 }
 0x59e   :  { %2655 = vmatprep.subr.bf16.mxu0 %v2654_v54  ;;  %2687 = vmatprep.subr.bf16.mxu1 %v2686_v12  ;;  %v1943_v54 = vld [vmem:[%s3886_s2 + $0x160] sm:$0xff]  ;;  %v1945_v12 = vld [vmem:[%s3886_s2 + $0x170] sm:$0xff] }
 0x653   :  { %v1493_v24 = vpop.f32.mrb[10].mxu0  ;;  %v1564_v30 = vpop.f32.mrb[10].mxu1 }
 0x654   :  { %v1495_v41 = vpop.f32.mrb[11].mxu0  ;;  %v1566_v49 = vpop.f32.mrb[11].mxu1 }
 0x655   :  { %v1573_v50 = vcombine.low %v1493_v24, %v1495_v41  ;;  %v1574_v56 = vcombine.low %v1564_v30, %v1566_v49  ;;  %v1915_v24 = vld [vmem:[%s3886_s2 + $0x80] sm:$0xff]  ;;  %v2694_v41 = vpack.c.bf16 %v1922_v11, %v1918_v4 }
 0x656   :  { %v1919_v30 = vld [vmem:[%s3886_s2 + $0xa0] sm:$0xff] }
 0x657   :  { %v1581_v62 = vrot.slane %v1573_v50, %v3202_v61  ;;  %v1588_v18 = vrot.slane %v1574_v56, %v3202_v61  ;;  %v2664_v49 = vpack.c.bf16 %v1919_v30, %v1915_v24  ;;  %v1917_v50 = vld [vmem:[%s3886_s2 + $0x90] sm:$0xff]  ;;  %v1959_v11 = vld [vmem:[%s3886_s2 + $0x1e0] sm:$0xff] }
 0x658   :  { %v1921_v56 = vld [vmem:[%s3886_s2 + $0xb0] sm:$0xff] }
 0x659   :  { %v1589_v31 = vcombine.low %v1581_v62, %v1588_v18  ;;  %v2696_v62 = vpack.c.bf16 %v1921_v56, %v1917_v50  ;;  %v1924_v18 = vld [vmem:[%s3886_s2 + $0xc8] sm:$0xff]  ;;  %v1957_v24 = vld [vmem:[%s3886_s2 + $0x1d0] sm:$0xff] }
 0x65b   :  { %v1591_v44 = vadd.f32 %v2191_v22, %v1589_v31  ;;  %v1928_v22 = vld [vmem:[%s3886_s2 + $0xe8] sm:$0xff]  ;;  %v1926_v31 = vld [vmem:[%s3886_s2 + $0xd8] sm:$0xff] }
 0x65d   :  { %v2192_v57 = vmul.f32 -1.442695, %v1591_v44  ;;  %v1599_v63 = vrot.slane %v1591_v44, 2  ;;  %v1610_v28 = vrot.slane %v1591_v44, 6  ;;  %v1607_v5 = vrot.slane %v1591_v44, 4 }
 0x65e   :  { %v2666_v44 = vpack.c.bf16 %v1928_v22, %v1924_v18 }
 0x65f   :  { %2800 = vpow2.f32 %v2192_v57  ;;  %v2193_v7 = vmul.f32 -1.442695, %v1599_v63  ;;  %v2194_v43 = vmul.f32 -1.442695, %v1610_v28  ;;  %v1930_v57 = vld [vmem:[%s3886_s2 + $0xf8] sm:$0xff]  ;;  %v1923_v63 = vld [vmem:[%s3886_s2 + $0xc0] sm:$0xff] }
 0x660   :  { %v2698_v28 = vpack.c.bf16 %v1930_v57, %v1926_v31 }
 0x661   :  { %2802 = vpow2.f32 %v2193_v7  ;;  %v1927_v7 = vld [vmem:[%s3886_s2 + $0xe0] sm:$0xff] }
 0x662   :  { %2804 = vpow2.f32 %v2194_v43  ;;  %v2668_v43 = vpack.c.bf16 %v1927_v7, %v1923_v63  ;;  %v2196_v63 = vld [vmem:[%s3888_s0 + $0x30] sm:$0xff] }
 0x669   :  { %v2801_v47 = vpop.eup %2800 }
 0x66a   :  { %v1595_v10 = vadd.f32 1.0, %v2801_v47  ;;  %v1925_v47 = vld [vmem:[%s3886_s2 + $0xd0] sm:$0xff] }
 0x66b   :  { %v2803_v19 = vpop.eup %2802 }
 0x66c   :  { %2806 = vrcp.f32 %v1595_v10  ;;  %v1604_v25 = vadd.f32 1.0, %v2803_v19  ;;  %v2805_v33 = vpop.eup %2804  ;;  %v1932_v19 = vld [vmem:[%s3886_s2 + $0x108] sm:$0xff] }
 0x66d   :  { %2808 = vtanh.f32 %v1607_v5  ;;  %v1615_v26 = vadd.f32 1.0, %v2805_v33  ;;  %v1929_v5 = vld [vmem:[%s3886_s2 + $0xf0] sm:$0xff]  ;;  %v1934_v33 = vld [vmem:[%s3886_s2 + $0x118] sm:$0xff] }
 0x66e   :  { %2810 = vrcp.f32 %v1604_v25  ;;  %v2700_v10 = vpack.c.bf16 %v1929_v5, %v1925_v47  ;;  %v1936_v25 = vld [vmem:[%s3886_s2 + $0x128] sm:$0xff] }
 0x66f   :  { %2812 = vrcp.f32 %v1615_v26  ;;  %v1935_v26 = vld [vmem:[%s3886_s2 + $0x120] sm:$0xff] }
 0x676   :  { %v2807_v46 = vpop.eup %2806 }
 0x677   :  { %v2809_v59 = vpop.eup %2808 }
 0x678   :  { %v2811_v60 = vpop.eup %2810  ;;  %v1620_v1 = vmul.f32 %v2809_v59, %v2807_v46  ;;  %v2670_v46 = vpack.c.bf16 %v1936_v25, %v1932_v19  ;;  %v1938_v59 = vld [vmem:[%s3886_s2 + $0x138] sm:$0xff] }
 0x679   :  { %v1619_v51 = vmul.f32 %v2811_v60, %v1618_v40  ;;  %v2813_v14 = vpop.eup %2812  ;;  %v1931_v60 = vld [vmem:[%s3886_s2 + $0x100] sm:$0xff]  ;;  %v2702_v40 = vpack.c.bf16 %v1938_v59, %v1934_v33 }
 0x67b   :  { %v1621_v20 = vadd.f32 %v1620_v1, %v1619_v51  ;;  %v2672_v51 = vpack.c.bf16 %v1935_v26, %v1931_v60  ;;  %v1933_v1 = vld [vmem:[%s3886_s2 + $0x110] sm:$0xff] }
 0x67d   :  { %2814 = vtanh.f32 %v1621_v20  ;;  %1624 = vst [vmem:[#allocation3] sm:$0x3] %v1621_v20  ;;  %v1937_v20 = vld [vmem:[%s3886_s2 + $0x130] sm:$0xff] }
 0x687   :  { %v2815_v15 = vpop.eup %2814 }
 0x688   :  { %v1623_v29 = vmul.f32 %v2815_v15, %v2813_v14  ;;  %v2704_v14 = vpack.c.bf16 %v1937_v20, %v1933_v1  ;;  %v1940_v15 = vld [vmem:[%s3886_s2 + $0x148] sm:$0xff] }
 0x68a   :  { %2195 = vst [vmem:[%s3889_s3 + $0xa] sm:$0x3] %v1623_v29  ;;  %1625 = vst [vmem:[#allocation2] sm:$0x3] %v1623_v29  ;;  %v1944_v29 = vld [vmem:[%s3886_s2 + $0x168] sm:$0xff] }
 0x68b   :  { %v2674_v34 = vpack.c.bf16 %v1944_v29, %v1940_v15 }
 0x691   :  { %v1630_v32 = vld [vmem:[#allocation2] sm:$0x3] }
 0x692   :  { %1760 = vmatmul.mubr.f32.vlgmr.msra.gmra.mrb[12].mxu0 %v1630_v32  ;;  %1831 = vmatmul.mubr.f32.vlgmr.msra.gmra.mrb[12].mxu1 %v1630_v32  ;;  %v1942_v32 = vld [vmem:[%s3886_s2 + $0x158] sm:$0xff] }
 0x693   :  { %2027 = vmatprep.mubr.f32.mxu0 %v2848_v3  ;;  %2098 = vmatprep.mubr.f32.mxu1 %v2848_v3  ;;  %v1899_v3 = vld [vmem:[%s3886_s2] sm:$0xff]  ;;  %v2706_v55 = vpack.c.bf16 %v1946_v42, %v1942_v32 }
 0x694   :  { %v2656_v23 = vpack.c.bf16 %v1903_v58, %v1899_v3  ;;  %2689 = vmatpush1.bf16.msra.mxu1 %v2688_v17  ;;  %v2676_v3 = vpack.c.bf16 %v1943_v54, %v1939_v45  ;;  %v1941_v58 = vld [vmem:[%s3886_s2 + $0x150] sm:$0xff]  ;;  %v1950_v17 = vld [vmem:[%s3886_s2 + $0x198] sm:$0xff] }
 0x695   :  { %2691 = vmatprep.subr.bf16.mxu1 %v2690_v21  ;;  %v2710_v53 = vpack.c.bf16 %v1954_v35, %v1950_v17  ;;  %v1953_v21 = vld [vmem:[%s3886_s2 + $0x1b0] sm:$0xff] }
 0x696   :  { %2657 = vmatpush1.bf16.msra.mxu0 %v2656_v23  ;;  %v2708_v23 = vpack.c.bf16 %v1945_v12, %v1941_v58  ;;  %v2712_v37 = vpack.c.bf16 %v1953_v21, %v1949_v16 }
 0x697   :  { %2659 = vmatprep.subr.bf16.mxu0 %v2658_v52  ;;  %v1951_v52 = vld [vmem:[%s3886_s2 + $0x1a0] sm:$0xff] }
 0x698   :  { %2693 = vmatpush1.bf16.msra.mxu1 %v2692_v48  ;;  %v2680_v0 = vpack.c.bf16 %v1951_v52, %v1947_v39  ;;  %v1958_v48 = vld [vmem:[%s3886_s2 + $0x1d8] sm:$0xff] }
 0x699   :  { %2695 = vmatprep.subr.bf16.mxu1 %v2694_v41  ;;  %v2714_v4 = vpack.c.bf16 %v1962_v2, %v1958_v48  ;;  %v1961_v41 = vld [vmem:[%s3886_s2 + $0x1f0] sm:$0xff] }
 0x69a   :  { %2661 = vmatpush1.bf16.msra.mxu0 %v2660_v36  ;;  %v1956_v36 = vld [vmem:[%s3886_s2 + $0x1c8] sm:$0xff] }
 0x69b   :  { %2663 = vmatprep.subr.bf16.mxu0 %v2662_v8  ;;  %v2682_v6 = vpack.c.bf16 %v1960_v38, %v1956_v36  ;;  %v1955_v8 = vld [vmem:[%s3886_s2 + $0x1c0] sm:$0xff] }
 0x69c   :  { %2697 = vmatpush1.bf16.msra.mxu1 %v2696_v62  ;;  %v2684_v30 = vpack.c.bf16 %v1959_v11, %v1955_v8 }
 0x69d   :  { %2699 = vmatprep.subr.bf16.mxu1 %v2698_v28 }
 0x69e   :  { %2665 = vmatpush1.bf16.msra.mxu0 %v2664_v49  ;;  %v2716_v49 = vpack.c.bf16 %v1961_v41, %v1957_v24 }
 0x69f   :  { %2667 = vmatprep.subr.bf16.mxu0 %v2666_v44 }
 0x6a0   :  { %2701 = vmatpush1.bf16.msra.mxu1 %v2700_v10 }
 0x6a1   :  { %2703 = vmatprep.subr.bf16.mxu1 %v2702_v40 }
 0x6a2   :  { %2669 = vmatpush1.bf16.msra.mxu0 %v2668_v43 }
 0x6a3   :  { %2671 = vmatprep.subr.bf16.mxu0 %v2670_v46 }
 0x6a4   :  { %2705 = vmatpush1.bf16.msra.mxu1 %v2704_v14  ;;  %v1886_v14 = vld [vmem:[#allocation3] sm:$0x3] }
 0x6a5   :  { %2707 = vmatprep.subr.bf16.mxu1 %v2706_v55 }
 0x6a6   :  { %2673 = vmatpush1.bf16.msra.mxu0 %v2672_v51 }
 0x6a7   :  { %2675 = vmatprep.subr.bf16.mxu0 %v2674_v34 }
 0x6a8   :  { %2709 = vmatpush1.bf16.msra.mxu1 %v2708_v23 }
 0x6a9   :  { %2711 = vmatprep.subr.bf16.mxu1 %v2710_v53 }
 0x6aa   :  { %2677 = vmatpush1.bf16.msra.mxu0 %v2676_v3 }
 0x6ab   :  { %2679 = vmatprep.subr.bf16.mxu0 %v2678_v27  ;;  %v2201_v27 = vld [vmem:[%s3888_s0 + $0x38] sm:$0xff] }
 0x6ac   :  { %2713 = vmatpush1.bf16.msra.mxu1 %v2712_v37 }
 0x6ad   :  { %2715 = vmatprep.subr.bf16.mxu1 %v2714_v4 }
 0x6ae   :  { %2681 = vmatpush1.bf16.msra.mxu0 %v2680_v0 }
 0x6af   :  { %2683 = vmatprep.subr.bf16.mxu0 %v2682_v6 }
 0x6b0   :  { %2717 = vmatpush1.bf16.msra.mxu1 %v2716_v49 }
 0x6b2   :  { %2685 = vmatpush1.bf16.msra.mxu0 %v2684_v30 }
 0x765   :  { %v1761_v50 = vpop.f32.mrb[12].mxu0  ;;  %v1832_v56 = vpop.f32.mrb[12].mxu1 }
 0x766   :  { %v1763_v62 = vpop.f32.mrb[13].mxu0  ;;  %v1834_v18 = vpop.f32.mrb[13].mxu1 }
 0x767   :  { %v1841_v22 = vcombine.low %v1761_v50, %v1763_v62  ;;  %v1842_v31 = vcombine.low %v1832_v56, %v1834_v18 }
 0x769   :  { %v1849_v44 = vrot.slane %v1841_v22, %v3202_v61  ;;  %v1856_v57 = vrot.slane %v1842_v31, %v3202_v61 }
 0x76b   :  { %v1857_v7 = vcombine.low %v1849_v44, %v1856_v57 }
 0x76d   :  { %v1859_v28 = vadd.f32 %v2196_v63, %v1857_v7 }
 0x76f   :  { %v2197_v43 = vmul.f32 -1.442695, %v1859_v28  ;;  %v1867_v47 = vrot.slane %v1859_v28, 2  ;;  %v1878_v10 = vrot.slane %v1859_v28, 6  ;;  %v1875_v33 = vrot.slane %v1859_v28, 4 }
 0x771   :  { %2816 = vpow2.f32 %v2197_v43  ;;  %v2198_v5 = vmul.f32 -1.442695, %v1867_v47  ;;  %v2199_v19 = vmul.f32 -1.442695, %v1878_v10 }
 0x773   :  { %2818 = vpow2.f32 %v2198_v5 }
 0x774   :  { %2820 = vpow2.f32 %v2199_v19 }
 0x77b   :  { %v2817_v25 = vpop.eup %2816 }
 0x77c   :  { %v1863_v46 = vadd.f32 1.0, %v2817_v25 }
 0x77d   :  { %v2819_v59 = vpop.eup %2818 }
 0x77e   :  { %2822 = vrcp.f32 %v1863_v46  ;;  %v1872_v60 = vadd.f32 1.0, %v2819_v59  ;;  %v2821_v26 = vpop.eup %2820 }
 0x77f   :  { %2824 = vtanh.f32 %v1875_v33  ;;  %v1883_v20 = vadd.f32 1.0, %v2821_v26 }
 0x780   :  { %2826 = vrcp.f32 %v1872_v60 }
 0x781   :  { %2828 = vrcp.f32 %v1883_v20 }
 0x788   :  { %v2823_v40 = vpop.eup %2822 }
 0x789   :  { %v2825_v51 = vpop.eup %2824 }
 0x78a   :  { %v2827_v1 = vpop.eup %2826  ;;  %v1888_v29 = vmul.f32 %v2825_v51, %v2823_v40 }
 0x78b   :  { %v1887_v15 = vmul.f32 %v2827_v1, %v1886_v14  ;;  %v2829_v34 = vpop.eup %2828 }
 0x78d   :  { %v1889_v32 = vadd.f32 %v1888_v29, %v1887_v15 }
 0x78f   :  { %2830 = vtanh.f32 %v1889_v32  ;;  %1892 = vst [vmem:[#allocation3] sm:$0x3] %v1889_v32 }
 0x796   :  { %v2154_v24 = vld [vmem:[#allocation3] sm:$0x3] }
 0x799   :  { %v2831_v42 = vpop.eup %2830 }
 0x79a   :  { %v1891_v45 = vmul.f32 %v2831_v42, %v2829_v34 }
 0x79c   :  { %2200 = vst [vmem:[%s3889_s3 + $0xc] sm:$0x3] %v1891_v45  ;;  %1893 = vst [vmem:[#allocation2] sm:$0x3] %v1891_v45 }
 0x7a3   :  { %v1898_v54 = vld [vmem:[#allocation2] sm:$0x3] }
 0x7a4   :  { %2028 = vmatmul.mubr.f32.vlgmr.msra.gmra.mrb[14].mxu0 %v1898_v54  ;;  %2099 = vmatmul.mubr.f32.vlgmr.msra.gmra.mrb[14].mxu1 %v1898_v54 }
 0x877   :  { %v2029_v55 = vpop.f32.mrb[14].mxu0  ;;  %v2100_v3 = vpop.f32.mrb[14].mxu1 }
 0x878   :  { %v2031_v58 = vpop.f32.mrb[15].mxu0  ;;  %v2102_v12 = vpop.f32.mrb[15].mxu1 }
 0x879   :  { %v2109_v23 = vcombine.low %v2029_v55, %v2031_v58  ;;  %v2110_v9 = vcombine.low %v2100_v3, %v2102_v12 }
 0x87b   :  { %v2117_v13 = vrot.slane %v2109_v23, %v3202_v61  ;;  %v2124_v17 = vrot.slane %v2110_v9, %v3202_v61 }
 0x87d   :  { %v2125_v35 = vcombine.low %v2117_v13, %v2124_v17 }
 0x87f   :  { %v2127_v39 = vadd.f32 %v2201_v27, %v2125_v35 }
 0x881   :  { %v2202_v52 = vmul.f32 -1.442695, %v2127_v39  ;;  %v2135_v53 = vrot.slane %v2127_v39, 2  ;;  %v2146_v16 = vrot.slane %v2127_v39, 6  ;;  %v2143_v37 = vrot.slane %v2127_v39, 4 }
 0x883   :  { %2832 = vpow2.f32 %v2202_v52  ;;  %v2203_v0 = vmul.f32 -1.442695, %v2135_v53  ;;  %v2204_v21 = vmul.f32 -1.442695, %v2146_v16 }
 0x885   :  { %2834 = vpow2.f32 %v2203_v0 }
 0x886   :  { %2836 = vpow2.f32 %v2204_v21 }
 0x88d   :  { %v2833_v36 = vpop.eup %2832 }
 0x88e   :  { %v2131_v38 = vadd.f32 1.0, %v2833_v36 }
 0x88f   :  { %v2835_v48 = vpop.eup %2834 }
 0x890   :  { %2838 = vrcp.f32 %v2131_v38  ;;  %v2140_v61 = vadd.f32 1.0, %v2835_v48  ;;  %v2837_v2 = vpop.eup %2836 }
 0x891   :  { %2840 = vtanh.f32 %v2143_v37  ;;  %v2151_v11 = vadd.f32 1.0, %v2837_v2 }
 0x892   :  { %2842 = vrcp.f32 %v2140_v61 }
 0x893   :  { %2844 = vrcp.f32 %v2151_v11 }
 0x89a   :  { %v2839_v6 = vpop.eup %2838 }
 0x89b   :  { %v2841_v4 = vpop.eup %2840 }
 0x89c   :  { %v2843_v8 = vpop.eup %2842  ;;  %v2156_v41 = vmul.f32 %v2841_v4, %v2839_v6 }
 0x89d   :  { %v2155_v30 = vmul.f32 %v2843_v8, %v2154_v24  ;;  %v2845_v50 = vpop.eup %2844 }
 0x89f   :  { %v2157_v49 = vadd.f32 %v2156_v41, %v2155_v30 }
 0x8a1   :  { %2846 = vtanh.f32 %v2157_v49  ;;  %2160 = vst [vmem:[#allocation3] sm:$0x3] %v2157_v49 }
 0x8ab   :  { %v2847_v56 = vpop.eup %2846 }
 0x8ac   :  { %v2159_v62 = vmul.f32 %v2847_v56, %v2845_v50 }
 0x8ae   :  { %2161 = vst [vmem:[#allocation2] sm:$0x3] %v2159_v62  ;;  %2205 = vst [vmem:[%s3889_s3 + $0xe] sm:$0x3] %v2159_v62 }

</bundles_post_ra>
